<compile_context>
chip_gen: v6e
topology: v6e:2x2x1
jax: 0.10.0
libtpu: 0.0.40
codegen_flags: <defaults>
</compile_context>

<pallas_src>
import functools

import jax
import jax.numpy as jnp
from jax.experimental import pallas as pl
from jax.experimental.pallas import tpu as pltpu

LEAKY_SLOPE = 0.01      # nn.LeakyReLU default negative_slope
C_M = 256               # msa/single channel dim (Linear(2560, 256), bert)
C_Z = 128               # pair channel dim (Dist36bin(128))
ESM2_DIM = 2560
N_BINS = 36
BERT_OUT = 23
LANE = 128
VMEM_LIMIT = 64 * 1024 * 1024   # safe on v5e/v6e (128 MiB) and v7x (64 MiB)


def _pick_tile(n, candidates):
    for t in candidates:
        if t <= n and n % t == 0:
            return t
    return n


# ----------------------------------------------------------------------------
# Linear:  y = x @ W + b   (row-tiled, bf16 MXU operands, f32 accumulation)
# ----------------------------------------------------------------------------
def linear_kernel(x_ref, w_ref, b_ref, o_ref):
    acc = jnp.dot(x_ref[...], w_ref[...], preferred_element_type=jnp.float32)
    o_ref[...] = (acc + b_ref[0, :]).astype(o_ref.dtype)


def linear_pallas(x2d, w, b, pad_out_to=None):
    m, k = x2d.shape
    n0 = w.shape[1]
    n = pad_out_to if pad_out_to else n0
    if n != n0:                                   # lane-dense output padding
        w = jnp.pad(w, ((0, 0), (0, n - n0)))
        b = jnp.pad(b, ((0, n - n0),))
    xb = x2d.astype(jnp.bfloat16)
    wb = w.astype(jnp.bfloat16)
    bf = b.astype(jnp.float32).reshape(1, n)
    tm = _pick_tile(m, (512, 256, 128, 64, 32, 16, 8))
    out = pl.pallas_call(
        linear_kernel,
        out_shape=jax.ShapeDtypeStruct((m, n), x2d.dtype),
        grid=(m // tm,),
        in_specs=[
            pl.BlockSpec((tm, k), lambda i: (i, 0)),
            pl.BlockSpec((k, n), lambda i: (0, 0)),
            pl.BlockSpec((1, n), lambda i: (0, 0)),
        ],
        out_specs=pl.BlockSpec((tm, n), lambda i: (i, 0)),
        compiler_params=pltpu.CompilerParams(
            dimension_semantics=("parallel",), vmem_limit_bytes=VMEM_LIMIT),
    )(xb, wb, bf)
    return out if n == n0 else out[:, :n0]


# ----------------------------------------------------------------------------
# 3x3 "same" conv (NHWC), row-tiled with explicit halo rows, 9 MXU matmuls,
# fused LeakyReLU.  Weights repacked to [9, Cin, Cout] (bf16).
# ----------------------------------------------------------------------------
def conv3x3_kernel(xm_ref, h0_ref, h1_ref, w_ref, b_ref, o_ref, *, apply_leaky):
    _, th, wd, cout = o_ref.shape
    cin = xm_ref.shape[-1]
    # [TH+2, Wp, Cin] haloed tile assembled from the blocked main + halo rows.
    xv = jnp.concatenate([xm_ref[0], h0_ref[0], h1_ref[0]], axis=0)
    acc = jnp.zeros((th * wd, cout), jnp.float32)
    for dy in range(3):
        for dx in range(3):
            patch = xv[dy:dy + th, dx:dx + wd, :].reshape(th * wd, cin)
            acc = acc + jnp.dot(patch, w_ref[dy * 3 + dx],
                                preferred_element_type=jnp.float32)
    acc = acc + b_ref[0, :]
    if apply_leaky:
        acc = jnp.where(acc >= 0, acc, LEAKY_SLOPE * acc)
    o_ref[0] = acc.reshape(th, wd, cout).astype(o_ref.dtype)


def conv3x3_pallas(x_nhwc, w_pt, b, apply_leaky, out_dtype=None, pad_cout_to=None):
    B, H, W, Cin = x_nhwc.shape
    cout0 = w_pt.shape[0]
    cout = pad_cout_to if pad_cout_to else cout0
    # repack PyTorch [Cout, Cin, 3, 3] -> [9, Cin, Cout], zero-pad Cout to 128
    w_t = jnp.transpose(w_pt, (2, 3, 1, 0)).reshape(9, Cin, cout0)
    if cout != cout0:
        w_t = jnp.pad(w_t, ((0, 0), (0, 0), (0, cout - cout0)))
        b = jnp.pad(b, ((0, cout - cout0),))
    w_t = w_t.astype(jnp.bfloat16)
    b2d = b.astype(jnp.float32).reshape(1, cout)
    xp = jnp.pad(x_nhwc.astype(jnp.bfloat16), ((0, 0), (1, 1), (1, 1), (0, 0)))
    Hp, Wp = H + 2, W + 2
    th = _pick_tile(H, (32, 16, 8))
    g = H // th
    kern = functools.partial(conv3x3_kernel, apply_leaky=apply_leaky)
    return pl.pallas_call(
        kern,
        out_shape=jax.ShapeDtypeStruct(
            (B, H, W, cout), out_dtype if out_dtype else x_nhwc.dtype),
        grid=(B, g),
        in_specs=[
            # main rows [i*th, i*th+th) of the padded input
            pl.BlockSpec((1, th, Wp, Cin), lambda bb, ii: (bb, ii, 0, 0)),
            # two halo rows i*th+th and i*th+th+1
            pl.BlockSpec((1, 1, Wp, Cin), lambda bb, ii: (bb, ii * th + th, 0, 0)),
            pl.BlockSpec((1, 1, Wp, Cin), lambda bb, ii: (bb, ii * th + th + 1, 0, 0)),
            pl.BlockSpec((9, Cin, cout), lambda bb, ii: (0, 0, 0)),
            pl.BlockSpec((1, cout), lambda bb, ii: (0, 0)),
        ],
        out_specs=pl.BlockSpec((1, th, W, cout), lambda bb, ii: (bb, ii, 0, 0)),
        compiler_params=pltpu.CompilerParams(
            dimension_semantics=("parallel", "parallel"),
            vmem_limit_bytes=VMEM_LIMIT),
    )(xp, xp, xp, w_t, b2d)


# ----------------------------------------------------------------------------
# Symmetrization (d + d^T)/2 fused via swapped index_map (no wrapper transpose).
# ----------------------------------------------------------------------------
def sym_kernel(a_ref, b_ref, o_ref):
    ti = a_ref.shape[1]
    for t in range(ti):
        row = a_ref[0, t]              # d[b, i*ti+t, :, :]
        col = b_ref[0, :, t, :]        # d[b, :, i*ti+t, :]  (transposed counterpart)
        o_ref[0, t] = ((row + col) * 0.5).astype(o_ref.dtype)


def symmetrize_pallas(d):
    B, N, _, C = d.shape
    ti = _pick_tile(N, (16, 8))
    g = N // ti
    return pl.pallas_call(
        sym_kernel,
        out_shape=jax.ShapeDtypeStruct(d.shape, d.dtype),
        grid=(B, g),
        in_specs=[
            pl.BlockSpec((1, ti, N, C), lambda bb, ii: (bb, ii, 0, 0)),
            pl.BlockSpec((1, N, ti, C), lambda bb, ii: (bb, 0, ii, 0)),
        ],
        out_specs=pl.BlockSpec((1, ti, N, C), lambda bb, ii: (bb, ii, 0, 0)),
        compiler_params=pltpu.CompilerParams(
            dimension_semantics=("parallel", "parallel"),
            vmem_limit_bytes=VMEM_LIMIT),
    )(d, d)


def dist36bin_pallas(z_nhwc, p):
    # z_nhwc: [B, N, N, 128]  (PyTorch z.permute(0,3,1,2) kept channels-last)
    h = conv3x3_pallas(z_nhwc, p['w1'], p['b1'], True, out_dtype=jnp.bfloat16)
    h = conv3x3_pallas(h, p['w2'], p['b2'], True, out_dtype=jnp.bfloat16)
    d = conv3x3_pallas(h, p['w3'], p['b3'], False, out_dtype=z_nhwc.dtype,
                       pad_cout_to=LANE)          # [B, N, N, 128], cols 36.. are zero
    sym = symmetrize_pallas(d)                    # lane-dense symmetrization
    B, N = d.shape[0], d.shape[1]
    return sym[..., :N_BINS].reshape(B, N * N, N_BINS)   # == dist.view(B, -1, 36)


# ----------------------------------------------------------------------------
# PsiPhi: Conv2d(1,1,(15,15),pad=7) -> LeakyReLU -> Conv2d(1,2,(2,256)),
# then [..., 0].permute(0, 2, 1).  The 15x15 conv is computed as 15 banded MXU
# matmuls (one per dy row shift) and the head conv is fused in the same kernel.
# ----------------------------------------------------------------------------
def psiphi_kernel(xp_ref, band_ref, w2_ref, b1_ref, b2_ref, o_ref):
    hp = xp_ref.shape[1]
    wd = band_ref.shape[2]
    n = hp - 14
    xv = xp_ref[0]                                  # [Hp, Wp] bf16
    acc = jnp.zeros((n, wd), jnp.float32)
    for dy in range(15):
        acc = acc + jnp.dot(xv[dy:dy + n, :], band_ref[dy],
                            preferred_element_type=jnp.float32)
    acc = acc + b1_ref[0]
    acc = jnp.where(acc >= 0, acc, LEAKY_SLOPE * acc)
    # Conv2d(1, 2, (2, 256)) == [256, 4] matmul + one-row shift.
    a = jnp.dot(acc.astype(jnp.bfloat16), w2_ref[...],
                preferred_element_type=jnp.float32)           # [n, 4]
    out = a[:n - 1, 0:2] + a[1:n, 2:4] + b2_ref[0, :]
    o_ref[0] = out.astype(o_ref.dtype)


def psiphi_pallas(x1d0, p):
    # x1d0: [B, N, 256]  (PyTorch x1D[:,0].unsqueeze(1) single channel)
    B, N, W = x1d0.shape
    Hp, Wp = N + 14, W + 14
    xp = jnp.pad(x1d0.astype(jnp.bfloat16), ((0, 0), (7, 7), (7, 7)))
    # banded matrices: band[dy, i, x] = w1[dy, i - x] for 0 <= i - x < 15
    w1 = p['w1'].astype(jnp.float32)                          # [15, 15]
    i = jnp.arange(Wp)[:, None]
    j = jnp.arange(W)[None, :]
    k = i - j
    valid = (k >= 0) & (k < 15)
    band = jnp.where(valid[None, :, :], w1[:, jnp.clip(k, 0, 14)], 0.0)
    band = band.astype(jnp.bfloat16)                          # [15, Wp, 256]
    w2 = p['w2']                                              # [2, 1, 2, 256]
    w_packed = jnp.concatenate([w2[:, 0, 0, :].T, w2[:, 0, 1, :].T],
                               axis=1).astype(jnp.bfloat16)   # [256, 4]
    return pl.pallas_call(
        psiphi_kernel,
        out_shape=jax.ShapeDtypeStruct((B, N - 1, 2), x1d0.dtype),
        grid=(B,),
        in_specs=[
            pl.BlockSpec((1, Hp, Wp), lambda bb: (bb, 0, 0)),
            pl.BlockSpec((15, Wp, W), lambda bb: (0, 0, 0)),
            pl.BlockSpec((W, 4), lambda bb: (0, 0)),
            pl.BlockSpec(memory_space=pltpu.MemorySpace.SMEM),   # conv1 bias (scalar)
            pl.BlockSpec((1, 2), lambda bb: (0, 0)),
        ],
        out_specs=pl.BlockSpec((1, N - 1, 2), lambda bb: (bb, 0, 0)),
        compiler_params=pltpu.CompilerParams(
            dimension_semantics=("parallel",), vmem_limit_bytes=VMEM_LIMIT),
    )(xp, band, w_packed, p['b1'].astype(jnp.float32),
      p['b2'].astype(jnp.float32).reshape(1, 2))


# ----------------------------------------------------------------------------
# x_prev recycling map: mean over S of pairwise distances of the translations.
# Lane-dense: per-coordinate [N, N] planes, no [N, N, 3] tensor.
# ----------------------------------------------------------------------------
def pairdist_kernel(xt_ref, xn_ref, o_ref):
    s_n = xt_ref.shape[1]
    n = xt_ref.shape[-1]
    acc = jnp.zeros((n, n), jnp.float32)
    for s in range(s_n):
        d2 = jnp.zeros((n, n), jnp.float32)
        for c in range(3):
            xrow = xt_ref[0, s, c:c + 1, :].astype(jnp.float32)   # [1, N]
            xcol = xn_ref[0, s, :, c:c + 1].astype(jnp.float32)   # [N, 1]
            diff = xrow - xcol                                    # x_j - x_i
            d2 = d2 + diff * diff
        acc = acc + jnp.sqrt(d2 + 1e-6)
    o_ref[0] = (acc * (1.0 / s_n)).astype(o_ref.dtype)


def pairdist_pallas(trans):
    # trans: [B, S, N, 3]
    B, S, N, _ = trans.shape
    xt = jnp.swapaxes(trans, -1, -2)                 # [B, S, 3, N] (lane-dense rows)
    out = pl.pallas_call(
        pairdist_kernel,
        out_shape=jax.ShapeDtypeStruct((B, N, N), trans.dtype),
        grid=(B,),
        in_specs=[
            pl.BlockSpec((1, S, 3, N), lambda bb: (bb, 0, 0, 0)),
            pl.BlockSpec((1, S, N, 3), lambda bb: (bb, 0, 0, 0)),
        ],
        out_specs=pl.BlockSpec((1, N, N), lambda bb: (bb, 0, 0)),
        compiler_params=pltpu.CompilerParams(
            dimension_semantics=("parallel",), vmem_limit_bytes=VMEM_LIMIT),
    )(xt, trans)
    return out[..., None]                            # [B, N, N, 1]


# ----------------------------------------------------------------------------
# Parameters (deterministic synthetic init, shapes dictated by __init__).
# ----------------------------------------------------------------------------
def init_params(key):
    ks = jax.random.split(key, 14)

    def w(k, shape, scale=0.02):
        return (scale * jax.random.normal(k, shape)).astype(jnp.float32)

    return {
        'esm2_w': w(ks[0], (ESM2_DIM, C_M)),       # Linear(2560, 256)
        'esm2_b': w(ks[1], (C_M,)),
        'bert_w': w(ks[2], (C_M, BERT_OUT)),       # nn.Linear(256, 23)
        'bert_b': w(ks[3], (BERT_OUT,)),
        'dist': {                                   # Dist36bin(128)
            'w1': w(ks[4], (C_Z, C_Z, 3, 3)), 'b1': w(ks[5], (C_Z,)),
            'w2': w(ks[6], (C_Z, C_Z, 3, 3)), 'b2': w(ks[7], (C_Z,)),
            'w3': w(ks[8], (N_BINS, C_Z, 3, 3)), 'b3': w(ks[9], (N_BINS,)),
        },
        'psiphi': {                                 # Conv2d(1,1,15,15,p=7) / Conv2d(1,2,(2,256))
            'w1': w(ks[10], (15, 15)), 'b1': w(ks[11], (1,)),
            'w2': w(ks[12], (2, 1, 2, 256)), 'b2': w(ks[13], (2,)),
        },
    }


# ----------------------------------------------------------------------------
# AlphaFold.forward (heads)
# ----------------------------------------------------------------------------
def alphafold_forward(params, feats, prevs, ancher_list, stub):
    B = feats['target_feat'].shape[0]
    N = feats['target_feat'].shape[-2]

    seq_mask = feats['seq_mask']
    pair_mask = seq_mask[..., None] * seq_mask[..., None, :]
    msa_mask = feats['msa_mask']
    del pair_mask, msa_mask, ancher_list   # only consumed by the (TODO) evoformer/structure

    # TODO(synk): InputEmbedder is not defined in the reference source; m/z are taken from stub.
    m = stub['m']                                   # [B, n_seq, N, 256]
    z = stub['z']                                   # [B, N, N, 128]

    m_1_prev, z_prev_in, x_prev_in, _ = prevs
    if m_1_prev is None or z_prev_in is None or x_prev_in is None:
        m_1_prev = jnp.zeros((B, N, C_M), m.dtype)
        z_prev_in = jnp.zeros((B, N, N, C_Z), z.dtype)
        x_prev_in = jnp.zeros((B, N, N, 1), z.dtype)
    # TODO(synk): RecyclingEmbedder is not defined; m_1_prev_emb / z_prev_emb additions skipped.

    # esm2 = self.esm2(feats['esm2'])[:, None, :, :];  m = m + esm2
    esm2_flat = linear_pallas(feats['esm2'].reshape(B * N, ESM2_DIM),
                              params['esm2_w'], params['esm2_b'])
    m = m + esm2_flat.reshape(B, N, C_M)[:, None, :, :]

    # TODO(synk): EvoformerStack is not defined; m, z pass through unchanged.
    # TODO(synk): StructureStack is not defined; x1D / translations taken from stub.
    x1D = stub['x1D']                                           # [B, S1, N, 256]
    collection_translation = stub['collection_translation']     # list of [B, S, N, 3]

    outputs = {}
    outputs['PsiPhi'] = psiphi_pallas(x1D[:, 0], params['psiphi'])     # [B, N-1, 2]
    x_prev = pairdist_pallas(collection_translation[-1])               # [B, N, N, 1]
    # TODO(synk): AngleResnet is not defined; outputs['angles'] omitted.
    outputs['CE'] = dist36bin_pallas(z, params['dist'])                # [B, N*N, 36]
    bert_flat = linear_pallas(m.reshape(-1, C_M), params['bert_w'],
                              params['bert_b'], pad_out_to=LANE)       # lane-dense, sliced to 23
    outputs['bert'] = bert_flat.reshape(*m.shape[:-1], BERT_OUT)       # [B, n_seq, N, 23]
    outputs['translation'] = collection_translation

    m_1_prev_out = m[..., 0, :, :]
    z_prev_out = z
    pLDDT = None   # TODO(synk): pLDDT comes from the undefined StructureStack.
    return m_1_prev_out, z_prev_out, x_prev, pLDDT, outputs


if __name__ == "__main__":
    key = jax.random.PRNGKey(0)
    B, N, n_seq, S = 2, 16, 4, 4
    k = jax.random.split(key, 8)
    params = init_params(k[0])

    feats = {
        'target_feat': jax.random.normal(k[1], (B, N, 22), jnp.float32),
        'residue_index': jnp.tile(jnp.arange(N, dtype=jnp.float32)[None], (B, 1)),
        'msa_feat': jax.random.normal(k[2], (B, n_seq, N, 49), jnp.float32),
        'seq_mask': jnp.ones((B, N), jnp.float32),
        'msa_mask': jnp.ones((B, n_seq, N), jnp.float32),
        'esm2': jax.random.normal(k[3], (B, N, ESM2_DIM), jnp.float32),
    }
    stub = {
        'm': jax.random.normal(k[4], (B, n_seq, N, C_M), jnp.float32),
        'z': jax.random.normal(k[5], (B, N, N, C_Z), jnp.float32),
        'x1D': jax.random.normal(k[6], (B, 2, N, C_M), jnp.float32),
        'collection_translation': [jax.random.normal(k[7], (B, S, N, 3), jnp.float32)],
    }
    prevs = [None, None, None, None]
    ancher_list = jnp.zeros((B,), jnp.int32)

    m_1_prev, z_prev, x_prev, pLDDT, outputs = alphafold_forward(
        params, feats, prevs, ancher_list, stub)
    jax.block_until_ready((m_1_prev, z_prev, x_prev,
                           outputs['CE'], outputs['bert'], outputs['PsiPhi']))

    assert outputs['CE'].shape == (B, N * N, 36)
    assert outputs['bert'].shape == (B, n_seq, N, 23)
    assert outputs['PsiPhi'].shape == (B, N - 1, 2)
    assert x_prev.shape == (B, N, N, 1)
    assert m_1_prev.shape == (B, N, C_M)
    assert z_prev.shape == (B, N, N, C_Z)
    print("KERNEL_OK")
</pallas_src>

<mosaic_0001>
module attributes {stable_mosaic.version = 11 : i64} {
  func.func @linear_kernel(%arg0: i32, %arg1: memref<32x2560xbf16, #tpu.memory_space<vmem>>, %arg2: memref<2560x256xbf16, #tpu.memory_space<vmem>>, %arg3: memref<1x256xf32, #tpu.memory_space<vmem>>, %arg4: memref<32x256xf32, #tpu.memory_space<vmem>>) attributes {dimension_semantics = [#tpu.dimension_semantics<parallel>], iteration_bounds = array<i64: 1>, scalar_prefetch = 0 : i64, scratch_operands = 0 : i64, tpu.core_type = #tpu.core_type<tc>, window_params = [{transform_indices = @transform_0, window_bounds = array<i64: 32, 2560>}, {pipeline_mode = #tpu.pipeline_mode<synchronous>, transform_indices = @transform_1, window_bounds = array<i64: 2560, 256>}, {pipeline_mode = #tpu.pipeline_mode<synchronous>, transform_indices = @transform_2, window_bounds = array<i64: 1, 256>}, {transform_indices = @transform_3, window_bounds = array<i64: 32, 256>}]} {
    %c0 = arith.constant 0 : index
    %c0_0 = arith.constant 0 : index
    %0 = vector.load %arg1[%c0, %c0_0] : memref<32x2560xbf16, #tpu.memory_space<vmem>>, vector<32x2560xbf16>
    %c0_1 = arith.constant 0 : index
    %c0_2 = arith.constant 0 : index
    %1 = vector.load %arg2[%c0_1, %c0_2] : memref<2560x256xbf16, #tpu.memory_space<vmem>>, vector<2560x256xbf16>
    %cst = arith.constant dense<0.000000e+00> : vector<32x256xf32>
    %2 = tpu.matmul %0, %1, %cst {dimension_numbers = #tpu.dot_dimension_numbers<[1], [0], [0], [1], [0, 0, 1, 1], [], []>} : vector<32x2560xbf16>, vector<2560x256xbf16>, vector<32x256xf32> -> vector<32x256xf32>
    %c0_3 = arith.constant 0 : index
    %c0_4 = arith.constant 0 : index
    %3 = vector.load %arg3[%c0_3, %c0_4] : memref<1x256xf32, #tpu.memory_space<vmem>>, vector<1x256xf32>
    %4 = vector.shape_cast %3 : vector<1x256xf32> to vector<256xf32>
    %5 = vector.shape_cast %4 : vector<256xf32> to vector<1x256xf32>
    %6 = vector.broadcast %5 : vector<1x256xf32> to vector<32x256xf32>
    %7 = arith.addf %2, %6 : vector<32x256xf32>
    %c0_5 = arith.constant 0 : index
    %c0_6 = arith.constant 0 : index
    %8 = vector.load %arg4[%c0_5, %c0_6] : memref<32x256xf32, #tpu.memory_space<vmem>>, vector<32x256xf32>
    tpu.vector_store %arg4[%c0_5, %c0_6], %7 {strides = array<i32>} : memref<32x256xf32, #tpu.memory_space<vmem>>, vector<32x256xf32>,
    return
  }
  func.func @transform_0(%arg0: i32) -> (i32, i32) {
    %c0_i32 = arith.constant 0 : i32
    %c0_i32_0 = arith.constant 0 : i32
    return %arg0, %c0_i32 : i32, i32
  }
  func.func @transform_1(%arg0: i32) -> (i32, i32) {
    %c0_i32 = arith.constant 0 : i32
    %c0_i32_0 = arith.constant 0 : i32
    %c0_i32_1 = arith.constant 0 : i32
    return %c0_i32, %c0_i32_0 : i32, i32
  }
  func.func @transform_2(%arg0: i32) -> (i32, i32) {
    %c0_i32 = arith.constant 0 : i32
    %c0_i32_0 = arith.constant 0 : i32
    %c0_i32_1 = arith.constant 0 : i32
    return %c0_i32, %c0_i32_0 : i32, i32
  }
  func.func @transform_3(%arg0: i32) -> (i32, i32) {
    %c0_i32 = arith.constant 0 : i32
    %c0_i32_0 = arith.constant 0 : i32
    return %arg0, %c0_i32 : i32, i32
  }
}

</mosaic_0001>

<bundles_post_ra>
// kernel: tpu_custom_call.1
= control target key start
LH: loop header
LB: loop body
LE: loop exit
PB: predicated region body
PF: predicated region fallthrough
CT: control target
= control target key end

     0   :  { %8 = vsyncpa [#allocation3], 0  ;;  %s3931_s0 = inlined_call_operand.hbm [shape: bf16[32,2560], index: 0, kind: input, shape index: {}]   ;;  %s3932_s1 = inlined_call_operand.hbm [shape: bf16[2560,256], index: 1, kind: input, shape index: {}]   ;;  %s3933_s2 = inlined_call_operand.hbm [shape: f32[1,256], index: 2, kind: input, shape index: {}]   ;;  %s3934_s3 = inlined_call_operand.hbm [shape: f32[32,256], index: 3, kind: output, shape index: {}]  }
   0x1   :  { %9 = vsyncpa [#allocation6], 0 }
   0x2   :  { %10 = vsyncpa [#allocation4], 0  ;;  %s3778_s12 = smov [#allocation5]  }
   0x3   :  { %s28_s13 = sshll.u32 %s3778_s12, 4  ;;  %s29_s13 = int_to_ptr.vmem [resolvable:$true] %s28_s13 }
   0x4   :  { %s3700_s14 = scalar_lea.vmem %s29_s13, 40960  ;;  %p3705_p1 = scmp.lt.s32.totalorder %s29_s13, %s29_s13 }
   0x5   :  { %p3701_p0 = scmp.ne.s32.totalorder %s29_s13, %s3700_s14  ;;  %p3706_p2 = scmp.lt.s32.totalorder %s3700_s14, %s3700_s14 }
   0x7   :  { %p3707_p3 = por %p3706_p2, %p3705_p1 }
   0x9   :  { %p3708_p4 = pnand %p3707_p3, %p3701_p0 }
   0xb   :  { %3711 = shalt.err (!%p3708_p4)
}
   0xc   :  { %s3779_s15 = smov 128   ;;  %s3780_s16 = smov 8  }
   0xd   :  { %34 = dma.hbm_to_vmem [thread:$0]  %s3932_s1, 40960, %s29_s13, [#allocation6], %s3779_s15, %s3779_s15, %s3780_s16  }
   0xe   :  { %s3781_s19 = smov [#allocation2]  }
   0xf   :  { %s16_s20 = sshll.u32 %s3781_s19, 4  ;;  %s17_s20 = int_to_ptr.vmem [resolvable:$true] %s16_s20 }
  0x10   :  { %s3720_s21 = scalar_lea.vmem %s17_s20, 5120  ;;  %p3725_p6 = scmp.lt.s32.totalorder %s17_s20, %s17_s20 }
  0x11   :  { %p3721_p5 = scmp.ne.s32.totalorder %s17_s20, %s3720_s21  ;;  %p3726_p7 = scmp.lt.s32.totalorder %s3720_s21, %s3720_s21 }
  0x13   :  { %p3727_p8 = por %p3726_p7, %p3725_p6 }
  0x15   :  { %p3728_p9 = pnand %p3727_p8, %p3721_p5 }
  0x17   :  { %3731 = shalt.err (!%p3728_p9)
}
  0x18   :  { %s3782_s22 = smov 1280   ;;  %s3783_s23 = smov 80  }
  0x19   :  { %22 = dma.hbm_to_vmem [thread:$0]  %s3931_s0, 5120, %s17_s20, [#allocation3], %s3782_s22, %s3782_s22, %s3783_s23  }
  0x1a   :  { %s3784_s26 = smov [#allocation7]  }
  0x1b   :  { %s41_s27 = sshll.u32 %s3784_s26, 4  ;;  %s42_s27 = int_to_ptr.vmem [resolvable:$true] %s41_s27 }
  0x1c   :  { %s3740_s1 = scalar_lea.vmem %s42_s27, 32  ;;  %p3745_p11 = scmp.lt.s32.totalorder %s42_s27, %s42_s27 }
  0x1d   :  { %p3741_p10 = scmp.ne.s32.totalorder %s42_s27, %s3740_s1  ;;  %p3746_p12 = scmp.lt.s32.totalorder %s3740_s1, %s3740_s1 }
  0x1f   :  { %p3747_p13 = por %p3746_p12, %p3745_p11 }
  0x21   :  { %p3748_p0 = pnand %p3747_p13, %p3741_p10 }
  0x23   :  { %3751 = shalt.err (!%p3748_p0)
}
  0x24   :  { %44 = dma.hbm_to_vmem [thread:$0]  %s3933_s2, 32, %s42_s27, [#allocation6]  }
  0x25   :  { %3772 = dma.done.wait [#allocation3], 5120  }
  0x26   :  { %3773 = vsyncadd [#allocation3], 4294962176 }
  0x27   :  { %3774 = dma.done.wait [#allocation6], 40992  }
  0x28   :  { %3775 = vsyncadd [#allocation6], 4294926304  ;;  %v3152_v0 = vld [vmem:[#allocation5 + $0x74] ss:$8 sps:$4 sm:$0xff]   ;;  %v3156_v2 = vld [vmem:[#allocation5 + $0x70] ss:$8 sps:$4 sm:$0xff]  }
  0x29   :  { %v3154_v1 = vld [vmem:[#allocation5 + $0x174] ss:$8 sps:$4 sm:$0xff]   ;;  %2226 = vmatprep.subr.bf16.mxu0 %v3152_v0  ;;  %v3157_v3 = vld [vmem:[#allocation5 + $0x170] ss:$8 sps:$4 sm:$0xff]   ;;  %v3158_v4 = vld [vmem:[#allocation5 + $0x64] ss:$8 sps:$4 sm:$0xff]  }
  0x2a   :  { %2279 = vmatprep.subr.bf16.mxu1 %v3154_v1  ;;  %2227 = vmatpush1.bf16.msra.mxu0 %v3156_v2  ;;  %v3160_v5 = vld [vmem:[#allocation5 + $0x164] ss:$8 sps:$4 sm:$0xff]   ;;  %v3162_v6 = vld [vmem:[#allocation5 + $0x60] ss:$8 sps:$4 sm:$0xff]   ;;  %v3164_v8 = vld [vmem:[#allocation5 + $0x54] ss:$8 sps:$4 sm:$0xff]  }
  0x2b   :  { %2280 = vmatpush1.bf16.msra.mxu1 %v3157_v3  ;;  %2228 = vmatprep.subr.bf16.mxu0 %v3158_v4  ;;  %v3163_v7 = vld [vmem:[#allocation5 + $0x160] ss:$8 sps:$4 sm:$0xff]   ;;  %v3166_v9 = vld [vmem:[#allocation5 + $0x154] ss:$8 sps:$4 sm:$0xff]   ;;  %v3168_v10 = vld [vmem:[#allocation5 + $0x50] ss:$8 sps:$4 sm:$0xff]  }
  0x2c   :  { %2281 = vmatprep.subr.bf16.mxu1 %v3160_v5  ;;  %v3169_v11 = vld [vmem:[#allocation5 + $0x150] ss:$8 sps:$4 sm:$0xff]   ;;  %v3170_v12 = vld [vmem:[#allocation5 + $0x44] ss:$8 sps:$4 sm:$0xff]   ;;  %v3174_v14 = vld [vmem:[#allocation5 + $0x40] ss:$8 sps:$4 sm:$0xff]  }
  0x2d   :  { %v3172_v13 = vld [vmem:[#allocation5 + $0x144] ss:$8 sps:$4 sm:$0xff]   ;;  %v3175_v15 = vld [vmem:[#allocation5 + $0x140] ss:$8 sps:$4 sm:$0xff]   ;;  %v3176_v16 = vld [vmem:[#allocation5 + $0x34] ss:$8 sps:$4 sm:$0xff]  }
  0x2e   :  { %2229 = vmatpush1.bf16.msra.mxu0 %v3162_v6  ;;  %v3178_v17 = vld [vmem:[#allocation5 + $0x134] ss:$8 sps:$4 sm:$0xff]   ;;  %v3180_v18 = vld [vmem:[#allocation5 + $0x30] ss:$8 sps:$4 sm:$0xff]   ;;  %v3182_v20 = vld [vmem:[#allocation5 + $0x24] ss:$8 sps:$4 sm:$0xff]  }
  0x2f   :  { %2282 = vmatpush1.bf16.msra.mxu1 %v3163_v7  ;;  %2230 = vmatprep.subr.bf16.mxu0 %v3164_v8  ;;  %v3181_v19 = vld [vmem:[#allocation5 + $0x130] ss:$8 sps:$4 sm:$0xff]   ;;  %v3184_v21 = vld [vmem:[#allocation5 + $0x124] ss:$8 sps:$4 sm:$0xff]   ;;  %v3186_v22 = vld [vmem:[#allocation5 + $0x20] ss:$8 sps:$4 sm:$0xff]  }
  0x30   :  { %2283 = vmatprep.subr.bf16.mxu1 %v3166_v9  ;;  %v3187_v23 = vld [vmem:[#allocation5 + $0x120] ss:$8 sps:$4 sm:$0xff]   ;;  %v3188_v24 = vld [vmem:[#allocation5 + $0x14] ss:$8 sps:$4 sm:$0xff]   ;;  %v3192_v26 = vld [vmem:[#allocation5 + $0x10] ss:$8 sps:$4 sm:$0xff]  }
  0x31   :  { %v3190_v25 = vld [vmem:[#allocation5 + $0x114] ss:$8 sps:$4 sm:$0xff]   ;;  %v3193_v27 = vld [vmem:[#allocation5 + $0x110] ss:$8 sps:$4 sm:$0xff]   ;;  %v3194_v28 = vld [vmem:[#allocation5 + $0x4] ss:$8 sps:$4 sm:$0xff]  }
  0x32   :  { %2231 = vmatpush1.bf16.msra.mxu0 %v3168_v10  ;;  %v3196_v29 = vld [vmem:[#allocation5 + $0x104] ss:$8 sps:$4 sm:$0xff]   ;;  %v3198_v30 = vld [vmem:[#allocation5] ss:$8 sps:$4 sm:$0xff]   ;;  %v3200_v32 = vld [vmem:[#allocation5 + $0xf4] ss:$8 sps:$4 sm:$0xff]  }
  0x33   :  { %2284 = vmatpush1.bf16.msra.mxu1 %v3169_v11  ;;  %2232 = vmatprep.subr.bf16.mxu0 %v3170_v12  ;;  %v3199_v31 = vld [vmem:[#allocation5 + $0x100] ss:$8 sps:$4 sm:$0xff]   ;;  %v3202_v33 = vld [vmem:[#allocation5 + $0x1f4] ss:$8 sps:$4 sm:$0xff]   ;;  %v3204_v34 = vld [vmem:[#allocation5 + $0xf0] ss:$8 sps:$4 sm:$0xff]  }
  0x34   :  { %2285 = vmatprep.subr.bf16.mxu1 %v3172_v13  ;;  %v3205_v35 = vld [vmem:[#allocation5 + $0x1f0] ss:$8 sps:$4 sm:$0xff]   ;;  %v3206_v36 = vld [vmem:[#allocation5 + $0xe4] ss:$8 sps:$4 sm:$0xff]   ;;  %v3210_v38 = vld [vmem:[#allocation5 + $0xe0] ss:$8 sps:$4 sm:$0xff]  }
  0x35   :  { %v3208_v37 = vld [vmem:[#allocation5 + $0x1e4] ss:$8 sps:$4 sm:$0xff]   ;;  %v3211_v39 = vld [vmem:[#allocation5 + $0x1e0] ss:$8 sps:$4 sm:$0xff]   ;;  %v3212_v40 = vld [vmem:[#allocation5 + $0xd4] ss:$8 sps:$4 sm:$0xff]  }
  0x36   :  { %2233 = vmatpush1.bf16.msra.mxu0 %v3174_v14  ;;  %v3214_v41 = vld [vmem:[#allocation5 + $0x1d4] ss:$8 sps:$4 sm:$0xff]   ;;  %v3216_v42 = vld [vmem:[#allocation5 + $0xd0] ss:$8 sps:$4 sm:$0xff]   ;;  %v3218_v44 = vld [vmem:[#allocation5 + $0xc4] ss:$8 sps:$4 sm:$0xff]  }
  0x37   :  { %2286 = vmatpush1.bf16.msra.mxu1 %v3175_v15  ;;  %2234 = vmatprep.subr.bf16.mxu0 %v3176_v16  ;;  %v3217_v43 = vld [vmem:[#allocation5 + $0x1d0] ss:$8 sps:$4 sm:$0xff]   ;;  %v3220_v45 = vld [vmem:[#allocation5 + $0x1c4] ss:$8 sps:$4 sm:$0xff]   ;;  %v3222_v46 = vld [vmem:[#allocation5 + $0xc0] ss:$8 sps:$4 sm:$0xff]  }
  0x38   :  { %2287 = vmatprep.subr.bf16.mxu1 %v3178_v17  ;;  %v3223_v47 = vld [vmem:[#allocation5 + $0x1c0] ss:$8 sps:$4 sm:$0xff]   ;;  %v3224_v48 = vld [vmem:[#allocation5 + $0xb4] ss:$8 sps:$4 sm:$0xff]   ;;  %v3228_v52 = vld [vmem:[#allocation5 + $0xb0] ss:$8 sps:$4 sm:$0xff]  }
  0x39   :  { %v3250_v49 = vld [vmem:[#allocation2 + $0x4] ss:$80 sps:$4 sm:$0xff]   ;;  %v3253_v51 = vld [vmem:[#allocation2 + $0xc] ss:$80 sps:$4 sm:$0xff]   ;;  %v3229_v53 = vld [vmem:[#allocation5 + $0x1b0] ss:$8 sps:$4 sm:$0xff]  }
  0x3a   :  { %2235 = vmatpush1.bf16.msra.mxu0 %v3180_v18  ;;  %v3226_v50 = vld [vmem:[#allocation5 + $0x1b4] ss:$8 sps:$4 sm:$0xff]   ;;  %2258 = vmatprep.mubr.bf16.mxu0 %v3250_v49  ;;  %v3230_v54 = vld [vmem:[#allocation5 + $0xa4] ss:$8 sps:$4 sm:$0xff]   ;;  %v3234_v56 = vld [vmem:[#allocation5 + $0xa0] ss:$8 sps:$4 sm:$0xff]  }
  0x3b   :  { %2288 = vmatpush1.bf16.msra.mxu1 %v3181_v19  ;;  %2236 = vmatprep.subr.bf16.mxu0 %v3182_v20  ;;  %v3232_v55 = vld [vmem:[#allocation5 + $0x1a4] ss:$8 sps:$4 sm:$0xff]   ;;  %v3235_v57 = vld [vmem:[#allocation5 + $0x1a0] ss:$8 sps:$4 sm:$0xff]   ;;  %v3236_v58 = vld [vmem:[#allocation5 + $0x94] ss:$8 sps:$4 sm:$0xff]  }
  0x3c   :  { %2289 = vmatprep.subr.bf16.mxu1 %v3184_v21  ;;  %2311 = vmatprep.mubr.bf16.mxu1 %v3253_v51  ;;  %v3238_v59 = vld [vmem:[#allocation5 + $0x194] ss:$8 sps:$4 sm:$0xff]   ;;  %v3240_v60 = vld [vmem:[#allocation5 + $0x90] ss:$8 sps:$4 sm:$0xff]   ;;  %v3242_v62 = vld [vmem:[#allocation5 + $0x84] ss:$8 sps:$4 sm:$0xff]  }
  0x3d   :  { %v3241_v61 = vld [vmem:[#allocation5 + $0x190] ss:$8 sps:$4 sm:$0xff]   ;;  %v3244_v63 = vld [vmem:[#allocation5 + $0x184] ss:$8 sps:$4 sm:$0xff]   ;;  %v3246_v0 = vld [vmem:[#allocation5 + $0x80] ss:$8 sps:$4 sm:$0xff]  }
  0x3e   :  { %2237 = vmatpush1.bf16.msra.mxu0 %v3186_v22  ;;  %v3247_v1 = vld [vmem:[#allocation5 + $0x180] ss:$8 sps:$4 sm:$0xff]   ;;  %v3256_v2 = vld [vmem:[#allocation5 + $0x274] ss:$8 sps:$4 sm:$0xff]   ;;  %v3254_v6 = vld [vmem:[#allocation5 + $0x270] ss:$8 sps:$4 sm:$0xff]  }
  0x3f   :  { %2290 = vmatpush1.bf16.msra.mxu1 %v3187_v23  ;;  %2238 = vmatprep.subr.bf16.mxu0 %v3188_v24  ;;  %v3259_v3 = vld [vmem:[#allocation5 + $0x374] ss:$8 sps:$4 sm:$0xff]   ;;  %v3248_v4 = vld [vmem:[#allocation2] ss:$80 sps:$4 sm:$0xff]   ;;  %v3251_v5 = vld [vmem:[#allocation2 + $0x8] ss:$80 sps:$4 sm:$0xff]  }
  0x40   :  { %2291 = vmatprep.subr.bf16.mxu1 %v3190_v25  ;;  %v3257_v7 = vld [vmem:[#allocation5 + $0x370] ss:$8 sps:$4 sm:$0xff]   ;;  %v3262_v8 = vld [vmem:[#allocation5 + $0x264] ss:$8 sps:$4 sm:$0xff]   ;;  %v3260_v10 = vld [vmem:[#allocation5 + $0x260] ss:$8 sps:$4 sm:$0xff]  }
  0x41   :  { %v3265_v9 = vld [vmem:[#allocation5 + $0x364] ss:$8 sps:$4 sm:$0xff]   ;;  %v3263_v11 = vld [vmem:[#allocation5 + $0x360] ss:$8 sps:$4 sm:$0xff]   ;;  %v3268_v12 = vld [vmem:[#allocation5 + $0x254] ss:$8 sps:$4 sm:$0xff]  }
  0x42   :  { %2239 = vmatpush1.bf16.msra.mxu0 %v3192_v26  ;;  %v3271_v13 = vld [vmem:[#allocation5 + $0x354] ss:$8 sps:$4 sm:$0xff]   ;;  %v3266_v14 = vld [vmem:[#allocation5 + $0x250] ss:$8 sps:$4 sm:$0xff]   ;;  %v3274_v16 = vld [vmem:[#allocation5 + $0x244] ss:$8 sps:$4 sm:$0xff]  }
  0x43   :  { %2292 = vmatpush1.bf16.msra.mxu1 %v3193_v27  ;;  %2240 = vmatprep.subr.bf16.mxu0 %v3194_v28  ;;  %v3269_v15 = vld [vmem:[#allocation5 + $0x350] ss:$8 sps:$4 sm:$0xff]   ;;  %v3277_v17 = vld [vmem:[#allocation5 + $0x344] ss:$8 sps:$4 sm:$0xff]   ;;  %v3272_v18 = vld [vmem:[#allocation5 + $0x240] ss:$8 sps:$4 sm:$0xff]  }
  0x44   :  { %2293 = vmatprep.subr.bf16.mxu1 %v3196_v29  ;;  %v3275_v19 = vld [vmem:[#allocation5 + $0x340] ss:$8 sps:$4 sm:$0xff]   ;;  %v3280_v20 = vld [vmem:[#allocation5 + $0x234] ss:$8 sps:$4 sm:$0xff]   ;;  %v3278_v22 = vld [vmem:[#allocation5 + $0x230] ss:$8 sps:$4 sm:$0xff]  }
  0x45   :  { %v3283_v21 = vld [vmem:[#allocation5 + $0x334] ss:$8 sps:$4 sm:$0xff]   ;;  %v3281_v23 = vld [vmem:[#allocation5 + $0x330] ss:$8 sps:$4 sm:$0xff]   ;;  %v3286_v24 = vld [vmem:[#allocation5 + $0x224] ss:$8 sps:$4 sm:$0xff]  }
  0x46   :  { %2241 = vmatpush1.bf16.msra.mxu0 %v3198_v30  ;;  %v3289_v25 = vld [vmem:[#allocation5 + $0x324] ss:$8 sps:$4 sm:$0xff]   ;;  %v3334_v27 = vld [vmem:[#allocation2 + $0xa0] ss:$80 sps:$4 sm:$0xff]   ;;  %v3319_v51 = vld [vmem:[#allocation5 + $0x3d4] ss:$8 sps:$4 sm:$0xff]  }
  0x47   :  { %2294 = vmatpush1.bf16.msra.mxu1 %v3199_v31  ;;  %2242 = vmatprep.subr.bf16.mxu0 %v3200_v32  ;;  %v3332_v26 = vld [vmem:[#allocation2 + $0xa4] ss:$80 sps:$4 sm:$0xff]   ;;  %v3335_v28 = vld [vmem:[#allocation2 + $0xac] ss:$80 sps:$4 sm:$0xff]   ;;  %v3284_v29 = vld [vmem:[#allocation5 + $0x220] ss:$8 sps:$4 sm:$0xff]  }
  0x48   :  { %2295 = vmatprep.subr.bf16.mxu1 %v3202_v33  ;;  %v3287_v30 = vld [vmem:[#allocation5 + $0x320] ss:$8 sps:$4 sm:$0xff]   ;;  %v3292_v31 = vld [vmem:[#allocation5 + $0x214] ss:$8 sps:$4 sm:$0xff]   ;;  %s3785_s0 = smov [#allocation8]  }
  0x49   :  { %v3295_v32 = vld [vmem:[#allocation5 + $0x314] ss:$8 sps:$4 sm:$0xff]   ;;  %v3343_v33 = vld [vmem:[#allocation2 + $0xa8] ss:$80 sps:$4 sm:$0xff]   ;;  %s2769_s2 = sshll.u32 %s3785_s0, 4  ;;  %s2770_s2 = int_to_ptr.vmem [resolvable:$true] %s2769_s2 }
  0x4a   :  { %2243 = vmatpush2.bf16.msra.mxu0 %v3204_v34  ;;  %v3290_v34 = vld [vmem:[#allocation5 + $0x210] ss:$8 sps:$4 sm:$0xff]   ;;  %v3311_v49 = vld [vmem:[#allocation5 + $0x3e0] ss:$8 sps:$4 sm:$0xff]   ;;  %s3752_s30 = scalar_lea.vmem %s2770_s2, 1024  ;;  %p3757_p2 = scmp.lt.s32.totalorder %s2770_s2, %s2770_s2 }
  0x4b   :  { %2296 = vmatpush2.bf16.msra.mxu1 %v3205_v35  ;;  %2244 = vmatprep.subr.bf16.mxu0 %v3206_v36  ;;  %v3293_v35 = vld [vmem:[#allocation5 + $0x310] ss:$8 sps:$4 sm:$0xff]   ;;  %v3298_v36 = vld [vmem:[#allocation5 + $0x204] ss:$8 sps:$4 sm:$0xff]   ;;  %p3753_p1 = scmp.ne.s32.totalorder %s2770_s2, %s3752_s30  ;;  %p3758_p3 = scmp.lt.s32.totalorder %s3752_s30, %s3752_s30 }
  0x4c   :  { %2297 = vmatprep.subr.bf16.mxu1 %v3208_v37  ;;  %v3301_v37 = vld [vmem:[#allocation5 + $0x304] ss:$8 sps:$4 sm:$0xff]  }
  0x4d   :  { %p3759_p4 = por %p3758_p3, %p3757_p2 }
  0x4e   :  { %2245 = vmatpush2.bf16.msra.mxu0 %v3210_v38  ;;  %v3296_v38 = vld [vmem:[#allocation5 + $0x200] ss:$8 sps:$4 sm:$0xff]  }
  0x4f   :  { %2298 = vmatpush2.bf16.msra.mxu1 %v3211_v39  ;;  %2246 = vmatprep.subr.bf16.mxu0 %v3212_v40  ;;  %v3299_v39 = vld [vmem:[#allocation5 + $0x300] ss:$8 sps:$4 sm:$0xff]   ;;  %v3304_v40 = vld [vmem:[#allocation5 + $0x2f4] ss:$8 sps:$4 sm:$0xff]   ;;  %p3760_p5 = pnand %p3759_p4, %p3753_p1 }
  0x50   :  { %2299 = vmatprep.subr.bf16.mxu1 %v3214_v41  ;;  %v3358_v41 = vld [vmem:[#allocation2 + $0x14] ss:$80 sps:$4 sm:$0xff]  }
  0x52   :  { %2247 = vmatpush2.bf16.msra.mxu0 %v3216_v42  ;;  %v3307_v42 = vld [vmem:[#allocation5 + $0x3f4] ss:$8 sps:$4 sm:$0xff]  }
  0x53   :  { %2300 = vmatpush2.bf16.msra.mxu1 %v3217_v43  ;;  %2248 = vmatprep.subr.bf16.mxu0 %v3218_v44  ;;  %v3361_v43 = vld [vmem:[#allocation2 + $0x1c] ss:$80 sps:$4 sm:$0xff]   ;;  %v3302_v44 = vld [vmem:[#allocation5 + $0x2f0] ss:$8 sps:$4 sm:$0xff]  }
  0x54   :  { %2301 = vmatprep.subr.bf16.mxu1 %v3220_v45  ;;  %v3305_v45 = vld [vmem:[#allocation5 + $0x3f0] ss:$8 sps:$4 sm:$0xff]  }
  0x56   :  { %2249 = vmatpush2.bf16.msra.mxu0 %v3222_v46  ;;  %v3310_v46 = vld [vmem:[#allocation5 + $0x2e4] ss:$8 sps:$4 sm:$0xff]  }
  0x57   :  { %2302 = vmatpush2.bf16.msra.mxu1 %v3223_v47  ;;  %2250 = vmatprep.subr.bf16.mxu0 %v3224_v48  ;;  %v3313_v47 = vld [vmem:[#allocation5 + $0x3e4] ss:$8 sps:$4 sm:$0xff]   ;;  %v3308_v48 = vld [vmem:[#allocation5 + $0x2e0] ss:$8 sps:$4 sm:$0xff]  }
  0x58   :  { %2303 = vmatprep.subr.bf16.mxu1 %v3226_v50  ;;  %v3316_v50 = vld [vmem:[#allocation5 + $0x2d4] ss:$8 sps:$4 sm:$0xff]  }
  0x5a   :  { %2251 = vmatpush2.bf16.msra.mxu0 %v3228_v52  ;;  %v3314_v52 = vld [vmem:[#allocation5 + $0x2d0] ss:$8 sps:$4 sm:$0xff]  }
  0x5b   :  { %2304 = vmatpush2.bf16.msra.mxu1 %v3229_v53  ;;  %2252 = vmatprep.subr.bf16.mxu0 %v3230_v54  ;;  %v3317_v53 = vld [vmem:[#allocation5 + $0x3d0] ss:$8 sps:$4 sm:$0xff]   ;;  %v3322_v54 = vld [vmem:[#allocation5 + $0x2c4] ss:$8 sps:$4 sm:$0xff]  }
  0x5c   :  { %2305 = vmatprep.subr.bf16.mxu1 %v3232_v55  ;;  %v3325_v55 = vld [vmem:[#allocation5 + $0x3c4] ss:$8 sps:$4 sm:$0xff]  }
  0x5e   :  { %2253 = vmatpush2.bf16.msra.mxu0 %v3234_v56  ;;  %v3320_v56 = vld [vmem:[#allocation5 + $0x2c0] ss:$8 sps:$4 sm:$0xff]  }
  0x5f   :  { %2306 = vmatpush2.bf16.msra.mxu1 %v3235_v57  ;;  %2254 = vmatprep.subr.bf16.mxu0 %v3236_v58  ;;  %v3323_v57 = vld [vmem:[#allocation5 + $0x3c0] ss:$8 sps:$4 sm:$0xff]   ;;  %v3328_v58 = vld [vmem:[#allocation5 + $0x2b4] ss:$8 sps:$4 sm:$0xff]  }
  0x60   :  { %2307 = vmatprep.subr.bf16.mxu1 %v3238_v59  ;;  %v3331_v59 = vld [vmem:[#allocation5 + $0x3b4] ss:$8 sps:$4 sm:$0xff]  }
  0x62   :  { %2255 = vmatpush2.bf16.msra.mxu0 %v3240_v60  ;;  %v3326_v60 = vld [vmem:[#allocation5 + $0x2b0] ss:$8 sps:$4 sm:$0xff]  }
  0x63   :  { %2308 = vmatpush2.bf16.msra.mxu1 %v3241_v61  ;;  %2256 = vmatprep.subr.bf16.mxu0 %v3242_v62  ;;  %v3329_v61 = vld [vmem:[#allocation5 + $0x3b0] ss:$8 sps:$4 sm:$0xff]   ;;  %v3339_v62 = vld [vmem:[#allocation5 + $0x2a4] ss:$8 sps:$4 sm:$0xff]  }
  0x64   :  { %2309 = vmatprep.subr.bf16.mxu1 %v3244_v63  ;;  %v3342_v63 = vld [vmem:[#allocation5 + $0x3a4] ss:$8 sps:$4 sm:$0xff]  }
  0x66   :  { %2257 = vmatpush2.bf16.msra.mxu0 %v3246_v0  ;;  %v3337_v0 = vld [vmem:[#allocation5 + $0x2a0] ss:$8 sps:$4 sm:$0xff]  }
  0x67   :  { %2310 = vmatpush2.bf16.msra.mxu1 %v3247_v1  ;;  %2332 = vmatprep.subr.bf16.mxu0 %v3256_v2  ;;  %v3340_v1 = vld [vmem:[#allocation5 + $0x3a0] ss:$8 sps:$4 sm:$0xff]   ;;  %v3346_v2 = vld [vmem:[#allocation5 + $0x294] ss:$8 sps:$4 sm:$0xff]  }
  0x68   :  { %2385 = vmatprep.subr.bf16.mxu1 %v3259_v3  ;;  %v3349_v3 = vld [vmem:[#allocation5 + $0x394] ss:$8 sps:$4 sm:$0xff]  }
  0x69   :  { %2259 = vmatmul.mubr.bf16.vlgmr.msra.gmra.mxu0 %v3248_v4  ;;  %v3344_v4 = vld [vmem:[#allocation5 + $0x290] ss:$8 sps:$4 sm:$0xff]  }
  0x6a   :  { %2312 = vmatmul.mubr.bf16.vlgmr.msra.gmra.mxu1 %v3251_v5  ;;  %2333 = vmatpush1.bf16.msra.mxu0 %v3254_v6  ;;  %v3347_v5 = vld [vmem:[#allocation5 + $0x390] ss:$8 sps:$4 sm:$0xff]   ;;  %v3352_v6 = vld [vmem:[#allocation5 + $0x284] ss:$8 sps:$4 sm:$0xff]  }
  0x6b   :  { %2386 = vmatpush1.bf16.msra.mxu1 %v3257_v7  ;;  %2334 = vmatprep.subr.bf16.mxu0 %v3262_v8  ;;  %v3355_v7 = vld [vmem:[#allocation5 + $0x384] ss:$8 sps:$4 sm:$0xff]   ;;  %v3350_v8 = vld [vmem:[#allocation5 + $0x280] ss:$8 sps:$4 sm:$0xff]  }
  0x6c   :  { %2387 = vmatprep.subr.bf16.mxu1 %v3265_v9  ;;  %2268 = vmatprep.mubr.bf16.mxu0 %v3332_v26  ;;  %v3353_v9 = vld [vmem:[#allocation5 + $0x380] ss:$8 sps:$4 sm:$0xff]   ;;  %v3380_v26 = vld [vmem:[#allocation5 + $0x550] ss:$8 sps:$4 sm:$0xff]  }
  0x6d   :  { %2321 = vmatprep.mubr.bf16.mxu1 %v3335_v28  ;;  %v3388_v28 = vld [vmem:[#allocation5 + $0x444] ss:$8 sps:$4 sm:$0xff]  }
  0x6e   :  { %2335 = vmatpush1.bf16.msra.mxu0 %v3260_v10  ;;  %v3364_v10 = vld [vmem:[#allocation5 + $0x474] ss:$8 sps:$4 sm:$0xff]  }
  0x6f   :  { %2388 = vmatpush1.bf16.msra.mxu1 %v3263_v11  ;;  %2336 = vmatprep.subr.bf16.mxu0 %v3268_v12  ;;  %v3367_v11 = vld [vmem:[#allocation5 + $0x574] ss:$8 sps:$4 sm:$0xff]   ;;  %v3356_v12 = vld [vmem:[#allocation2 + $0x10] ss:$80 sps:$4 sm:$0xff]  }
  0x70   :  { %2389 = vmatprep.subr.bf16.mxu1 %v3271_v13  ;;  %v3359_v13 = vld [vmem:[#allocation2 + $0x18] ss:$80 sps:$4 sm:$0xff]  }
  0x71   :  { %2269 = vmatmul.mubr.bf16.gmra.mxu0 %v3334_v27  ;;  %v3385_v27 = vld [vmem:[#allocation2 + $0xb8] ss:$80 sps:$4 sm:$0xff]  }
  0x72   :  { %2337 = vmatpush1.bf16.msra.mxu0 %v3266_v14  ;;  %2322 = vmatmul.mubr.bf16.gmra.mxu1 %v3343_v33  ;;  %v3362_v14 = vld [vmem:[#allocation5 + $0x470] ss:$8 sps:$4 sm:$0xff]   ;;  %v3466_v33 = vld [vmem:[#allocation2 + $0x24] ss:$80 sps:$4 sm:$0xff]  }
  0x73   :  { %2390 = vmatpush1.bf16.msra.mxu1 %v3269_v15  ;;  %2338 = vmatprep.subr.bf16.mxu0 %v3274_v16  ;;  %v3365_v15 = vld [vmem:[#allocation5 + $0x570] ss:$8 sps:$4 sm:$0xff]   ;;  %v3370_v16 = vld [vmem:[#allocation5 + $0x464] ss:$8 sps:$4 sm:$0xff]  }
  0x74   :  { %2391 = vmatprep.subr.bf16.mxu1 %v3277_v17  ;;  %2364 = vmatprep.mubr.bf16.mxu0 %v3358_v41  ;;  %v3373_v17 = vld [vmem:[#allocation5 + $0x564] ss:$8 sps:$4 sm:$0xff]   ;;  %v3401_v41 = vld [vmem:[#allocation5 + $0x520] ss:$8 sps:$4 sm:$0xff]  }
  0x75   :  { %2417 = vmatprep.mubr.bf16.mxu1 %v3361_v43  ;;  %v3409_v43 = vld [vmem:[#allocation5 + $0x514] ss:$8 sps:$4 sm:$0xff]  }
  0x76   :  { %2339 = vmatpush1.bf16.msra.mxu0 %v3272_v18  ;;  %v3374_v18 = vld [vmem:[#allocation2 + $0xb4] ss:$80 sps:$4 sm:$0xff]  }
  0x77   :  { %2392 = vmatpush1.bf16.msra.mxu1 %v3275_v19  ;;  %2340 = vmatprep.subr.bf16.mxu0 %v3280_v20  ;;  %v3383_v19 = vld [vmem:[#allocation2 + $0xbc] ss:$80 sps:$4 sm:$0xff]   ;;  %v3368_v20 = vld [vmem:[#allocation5 + $0x460] ss:$8 sps:$4 sm:$0xff]  }
  0x78   :  { %2393 = vmatprep.subr.bf16.mxu1 %v3283_v21  ;;  %v3371_v21 = vld [vmem:[#allocation5 + $0x560] ss:$8 sps:$4 sm:$0xff]  }
  0x7a   :  { %2341 = vmatpush1.bf16.msra.mxu0 %v3278_v22  ;;  %v3379_v22 = vld [vmem:[#allocation5 + $0x454] ss:$8 sps:$4 sm:$0xff]  }
  0x7b   :  { %2394 = vmatpush1.bf16.msra.mxu1 %v3281_v23  ;;  %2342 = vmatprep.subr.bf16.mxu0 %v3286_v24  ;;  %v3382_v23 = vld [vmem:[#allocation5 + $0x554] ss:$8 sps:$4 sm:$0xff]   ;;  %v3376_v24 = vld [vmem:[#allocation2 + $0xb0] ss:$80 sps:$4 sm:$0xff]  }
  0x7c   :  { %2395 = vmatprep.subr.bf16.mxu1 %v3289_v25  ;;  %v3377_v25 = vld [vmem:[#allocation5 + $0x450] ss:$8 sps:$4 sm:$0xff]  }
  0x7e   :  { %2343 = vmatpush1.bf16.msra.mxu0 %v3284_v29  ;;  %v3391_v29 = vld [vmem:[#allocation5 + $0x544] ss:$8 sps:$4 sm:$0xff]  }
  0x7f   :  { %2396 = vmatpush1.bf16.msra.mxu1 %v3287_v30  ;;  %2344 = vmatprep.subr.bf16.mxu0 %v3292_v31  ;;  %v3386_v30 = vld [vmem:[#allocation5 + $0x440] ss:$8 sps:$4 sm:$0xff]  }
  0x80   :  { %2397 = vmatprep.subr.bf16.mxu1 %v3295_v32  ;;  %v3389_v31 = vld [vmem:[#allocation5 + $0x540] ss:$8 sps:$4 sm:$0xff]   ;;  %v3394_v32 = vld [vmem:[#allocation5 + $0x434] ss:$8 sps:$4 sm:$0xff]  }
  0x82   :  { %2345 = vmatpush1.bf16.msra.mxu0 %v3290_v34  ;;  %v3397_v34 = vld [vmem:[#allocation5 + $0x534] ss:$8 sps:$4 sm:$0xff]  }
  0x83   :  { %2398 = vmatpush1.bf16.msra.mxu1 %v3293_v35  ;;  %2346 = vmatprep.subr.bf16.mxu0 %v3298_v36  ;;  %v3469_v35 = vld [vmem:[#allocation2 + $0x2c] ss:$80 sps:$4 sm:$0xff]   ;;  %v3392_v36 = vld [vmem:[#allocation5 + $0x430] ss:$8 sps:$4 sm:$0xff]  }
  0x84   :  { %2399 = vmatprep.subr.bf16.mxu1 %v3301_v37  ;;  %v3395_v37 = vld [vmem:[#allocation5 + $0x530] ss:$8 sps:$4 sm:$0xff]  }
  0x86   :  { %2347 = vmatpush1.bf16.msra.mxu0 %v3296_v38  ;;  %v3400_v38 = vld [vmem:[#allocation5 + $0x424] ss:$8 sps:$4 sm:$0xff]  }
  0x87   :  { %2400 = vmatpush1.bf16.msra.mxu1 %v3299_v39  ;;  %2348 = vmatprep.subr.bf16.mxu0 %v3304_v40  ;;  %v3403_v39 = vld [vmem:[#allocation5 + $0x524] ss:$8 sps:$4 sm:$0xff]   ;;  %v3398_v40 = vld [vmem:[#allocation5 + $0x420] ss:$8 sps:$4 sm:$0xff]  }
  0x88   :  { %2401 = vmatprep.subr.bf16.mxu1 %v3307_v42  ;;  %v3406_v42 = vld [vmem:[#allocation5 + $0x414] ss:$8 sps:$4 sm:$0xff]  }
  0x8a   :  { %2349 = vmatpush2.bf16.msra.mxu0 %v3302_v44  ;;  %v3404_v44 = vld [vmem:[#allocation5 + $0x410] ss:$8 sps:$4 sm:$0xff]  }
  0x8b   :  { %2402 = vmatpush2.bf16.msra.mxu1 %v3305_v45  ;;  %2350 = vmatprep.subr.bf16.mxu0 %v3310_v46  ;;  %v3407_v45 = vld [vmem:[#allocation5 + $0x510] ss:$8 sps:$4 sm:$0xff]   ;;  %v3412_v46 = vld [vmem:[#allocation5 + $0x404] ss:$8 sps:$4 sm:$0xff]  }
  0x8c   :  { %2403 = vmatprep.subr.bf16.mxu1 %v3313_v47  ;;  %v3415_v47 = vld [vmem:[#allocation5 + $0x504] ss:$8 sps:$4 sm:$0xff]  }
  0x8e   :  { %2351 = vmatpush2.bf16.msra.mxu0 %v3308_v48  ;;  %v3410_v48 = vld [vmem:[#allocation5 + $0x400] ss:$8 sps:$4 sm:$0xff]  }
  0x8f   :  { %2404 = vmatpush2.bf16.msra.mxu1 %v3311_v49  ;;  %2352 = vmatprep.subr.bf16.mxu0 %v3316_v50  ;;  %v3413_v49 = vld [vmem:[#allocation5 + $0x500] ss:$8 sps:$4 sm:$0xff]   ;;  %v3418_v50 = vld [vmem:[#allocation5 + $0x4f4] ss:$8 sps:$4 sm:$0xff]  }
  0x90   :  { %2405 = vmatprep.subr.bf16.mxu1 %v3319_v51  ;;  %v3421_v51 = vld [vmem:[#allocation5 + $0x5f4] ss:$8 sps:$4 sm:$0xff]  }
  0x92   :  { %2353 = vmatpush2.bf16.msra.mxu0 %v3314_v52  ;;  %v3416_v52 = vld [vmem:[#allocation5 + $0x4f0] ss:$8 sps:$4 sm:$0xff]  }
  0x93   :  { %2406 = vmatpush2.bf16.msra.mxu1 %v3317_v53  ;;  %2354 = vmatprep.subr.bf16.mxu0 %v3322_v54  ;;  %v3419_v53 = vld [vmem:[#allocation5 + $0x5f0] ss:$8 sps:$4 sm:$0xff]   ;;  %v3424_v54 = vld [vmem:[#allocation5 + $0x4e4] ss:$8 sps:$4 sm:$0xff]  }
  0x94   :  { %2407 = vmatprep.subr.bf16.mxu1 %v3325_v55  ;;  %v3427_v55 = vld [vmem:[#allocation5 + $0x5e4] ss:$8 sps:$4 sm:$0xff]  }
  0x96   :  { %2355 = vmatpush2.bf16.msra.mxu0 %v3320_v56  ;;  %v3422_v56 = vld [vmem:[#allocation5 + $0x4e0] ss:$8 sps:$4 sm:$0xff]  }
  0x97   :  { %2408 = vmatpush2.bf16.msra.mxu1 %v3323_v57  ;;  %2356 = vmatprep.subr.bf16.mxu0 %v3328_v58  ;;  %v3425_v57 = vld [vmem:[#allocation5 + $0x5e0] ss:$8 sps:$4 sm:$0xff]   ;;  %v3430_v58 = vld [vmem:[#allocation5 + $0x4d4] ss:$8 sps:$4 sm:$0xff]  }
  0x98   :  { %2409 = vmatprep.subr.bf16.mxu1 %v3331_v59  ;;  %v3433_v59 = vld [vmem:[#allocation5 + $0x5d4] ss:$8 sps:$4 sm:$0xff]  }
  0x9a   :  { %2357 = vmatpush2.bf16.msra.mxu0 %v3326_v60  ;;  %v3428_v60 = vld [vmem:[#allocation5 + $0x4d0] ss:$8 sps:$4 sm:$0xff]  }
  0x9b   :  { %2410 = vmatpush2.bf16.msra.mxu1 %v3329_v61  ;;  %2358 = vmatprep.subr.bf16.mxu0 %v3339_v62  ;;  %v3431_v61 = vld [vmem:[#allocation5 + $0x5d0] ss:$8 sps:$4 sm:$0xff]   ;;  %v3436_v62 = vld [vmem:[#allocation5 + $0x4c4] ss:$8 sps:$4 sm:$0xff]  }
  0x9c   :  { %2411 = vmatprep.subr.bf16.mxu1 %v3342_v63  ;;  %v3439_v63 = vld [vmem:[#allocation5 + $0x5c4] ss:$8 sps:$4 sm:$0xff]  }
  0x9e   :  { %2359 = vmatpush2.bf16.msra.mxu0 %v3337_v0  ;;  %v3434_v0 = vld [vmem:[#allocation5 + $0x4c0] ss:$8 sps:$4 sm:$0xff]  }
  0x9f   :  { %2412 = vmatpush2.bf16.msra.mxu1 %v3340_v1  ;;  %2360 = vmatprep.subr.bf16.mxu0 %v3346_v2  ;;  %v3437_v1 = vld [vmem:[#allocation5 + $0x5c0] ss:$8 sps:$4 sm:$0xff]   ;;  %v3442_v2 = vld [vmem:[#allocation5 + $0x4b4] ss:$8 sps:$4 sm:$0xff]  }
  0xa0   :  { %2413 = vmatprep.subr.bf16.mxu1 %v3349_v3  ;;  %v3445_v3 = vld [vmem:[#allocation5 + $0x5b4] ss:$8 sps:$4 sm:$0xff]  }
  0xa2   :  { %2361 = vmatpush2.bf16.msra.mxu0 %v3344_v4  ;;  %v3440_v4 = vld [vmem:[#allocation5 + $0x4b0] ss:$8 sps:$4 sm:$0xff]  }
  0xa3   :  { %2414 = vmatpush2.bf16.msra.mxu1 %v3347_v5  ;;  %2362 = vmatprep.subr.bf16.mxu0 %v3352_v6  ;;  %v3443_v5 = vld [vmem:[#allocation5 + $0x5b0] ss:$8 sps:$4 sm:$0xff]   ;;  %v3448_v6 = vld [vmem:[#allocation5 + $0x4a4] ss:$8 sps:$4 sm:$0xff]  }
  0xa4   :  { %2415 = vmatprep.subr.bf16.mxu1 %v3355_v7  ;;  %v3451_v7 = vld [vmem:[#allocation5 + $0x5a4] ss:$8 sps:$4 sm:$0xff]  }
  0xa6   :  { %2363 = vmatpush2.bf16.msra.mxu0 %v3350_v8  ;;  %v3446_v8 = vld [vmem:[#allocation5 + $0x4a0] ss:$8 sps:$4 sm:$0xff]  }
  0xa7   :  { %2416 = vmatpush2.bf16.msra.mxu1 %v3353_v9  ;;  %2438 = vmatprep.subr.bf16.mxu0 %v3364_v10  ;;  %v3449_v9 = vld [vmem:[#allocation5 + $0x5a0] ss:$8 sps:$4 sm:$0xff]   ;;  %v3454_v10 = vld [vmem:[#allocation5 + $0x494] ss:$8 sps:$4 sm:$0xff]  }
  0xa8   :  { %2491 = vmatprep.subr.bf16.mxu1 %v3367_v11  ;;  %v3457_v11 = vld [vmem:[#allocation5 + $0x594] ss:$8 sps:$4 sm:$0xff]  }
  0xa9   :  { %2365 = vmatmul.mubr.bf16.vlgmr.msra.gmra.mxu0 %v3356_v12  ;;  %v3452_v12 = vld [vmem:[#allocation5 + $0x490] ss:$8 sps:$4 sm:$0xff]  }
  0xaa   :  { %2418 = vmatmul.mubr.bf16.vlgmr.msra.gmra.mxu1 %v3359_v13  ;;  %2439 = vmatpush1.bf16.msra.mxu0 %v3362_v14  ;;  %v3455_v13 = vld [vmem:[#allocation5 + $0x590] ss:$8 sps:$4 sm:$0xff]   ;;  %v3460_v14 = vld [vmem:[#allocation5 + $0x484] ss:$8 sps:$4 sm:$0xff]  }
  0xab   :  { %2492 = vmatpush1.bf16.msra.mxu1 %v3365_v15  ;;  %2440 = vmatprep.subr.bf16.mxu0 %v3370_v16  ;;  %v3463_v15 = vld [vmem:[#allocation5 + $0x584] ss:$8 sps:$4 sm:$0xff]   ;;  %v3458_v16 = vld [vmem:[#allocation5 + $0x480] ss:$8 sps:$4 sm:$0xff]  }
  0xac   :  { %2493 = vmatprep.subr.bf16.mxu1 %v3373_v17  ;;  %2374 = vmatprep.mubr.bf16.mxu0 %v3374_v18  ;;  %v3461_v17 = vld [vmem:[#allocation5 + $0x580] ss:$8 sps:$4 sm:$0xff]   ;;  %v3472_v18 = vld [vmem:[#allocation5 + $0x674] ss:$8 sps:$4 sm:$0xff]  }
  0xad   :  { %2427 = vmatprep.mubr.bf16.mxu1 %v3383_v19  ;;  %v3475_v19 = vld [vmem:[#allocation5 + $0x774] ss:$8 sps:$4 sm:$0xff]  }
  0xae   :  { %2441 = vmatpush1.bf16.msra.mxu0 %v3368_v20  ;;  %v3464_v20 = vld [vmem:[#allocation2 + $0x20] ss:$80 sps:$4 sm:$0xff]  }
  0xaf   :  { %2494 = vmatpush1.bf16.msra.mxu1 %v3371_v21  ;;  %2442 = vmatprep.subr.bf16.mxu0 %v3379_v22  ;;  %v3467_v21 = vld [vmem:[#allocation2 + $0x28] ss:$80 sps:$4 sm:$0xff]  }
  0xb0   :  { %2495 = vmatprep.subr.bf16.mxu1 %v3382_v23  ;;  %v3470_v22 = vld [vmem:[#allocation5 + $0x670] ss:$8 sps:$4 sm:$0xff]  }
  0xb1   :  { %2375 = vmatmul.mubr.bf16.gmra.mxu0 %v3376_v24  ;;  %v3473_v23 = vld [vmem:[#allocation5 + $0x770] ss:$8 sps:$4 sm:$0xff]   ;;  %v3478_v24 = vld [vmem:[#allocation5 + $0x664] ss:$8 sps:$4 sm:$0xff]  }
  0xb2   :  { %2428 = vmatmul.mubr.bf16.gmra.mxu1 %v3385_v27  ;;  %2443 = vmatpush1.bf16.msra.mxu0 %v3377_v25  ;;  %v3481_v25 = vld [vmem:[#allocation5 + $0x764] ss:$8 sps:$4 sm:$0xff]  }
  0xb3   :  { %2496 = vmatpush1.bf16.msra.mxu1 %v3380_v26  ;;  %2444 = vmatprep.subr.bf16.mxu0 %v3388_v28  ;;  %v3482_v26 = vld [vmem:[#allocation2 + $0xc4] ss:$80 sps:$4 sm:$0xff]   ;;  %v3491_v27 = vld [vmem:[#allocation2 + $0xcc] ss:$80 sps:$4 sm:$0xff]   ;;  %v3476_v28 = vld [vmem:[#allocation5 + $0x660] ss:$8 sps:$4 sm:$0xff]  }
  0xb4   :  { %2497 = vmatprep.subr.bf16.mxu1 %v3391_v29  ;;  %2470 = vmatprep.mubr.bf16.mxu0 %v3466_v33  ;;  %v3479_v29 = vld [vmem:[#allocation5 + $0x760] ss:$8 sps:$4 sm:$0xff]   ;;  %v3485_v33 = vld [vmem:[#allocation5 + $0x650] ss:$8 sps:$4 sm:$0xff]  }
  0xb5   :  { %2523 = vmatprep.mubr.bf16.mxu1 %v3469_v35  ;;  %v3488_v35 = vld [vmem:[#allocation5 + $0x750] ss:$8 sps:$4 sm:$0xff]  }
  0xb6   :  { %2445 = vmatpush1.bf16.msra.mxu0 %v3386_v30  ;;  %v3487_v30 = vld [vmem:[#allocation5 + $0x654] ss:$8 sps:$4 sm:$0xff]  }
  0xb7   :  { %2498 = vmatpush1.bf16.msra.mxu1 %v3389_v31  ;;  %2446 = vmatprep.subr.bf16.mxu0 %v3394_v32  ;;  %v3490_v31 = vld [vmem:[#allocation5 + $0x754] ss:$8 sps:$4 sm:$0xff]   ;;  %v3484_v32 = vld [vmem:[#allocation2 + $0xc0] ss:$80 sps:$4 sm:$0xff]  }
  0xb8   :  { %2499 = vmatprep.subr.bf16.mxu1 %v3397_v34  ;;  %v3493_v34 = vld [vmem:[#allocation2 + $0xc8] ss:$80 sps:$4 sm:$0xff]  }
  0xba   :  { %2447 = vmatpush1.bf16.msra.mxu0 %v3392_v36  ;;  %v3496_v36 = vld [vmem:[#allocation5 + $0x644] ss:$8 sps:$4 sm:$0xff]  }
  0xbb   :  { %2500 = vmatpush1.bf16.msra.mxu1 %v3395_v37  ;;  %2448 = vmatprep.subr.bf16.mxu0 %v3400_v38  ;;  %v3499_v37 = vld [vmem:[#allocation5 + $0x744] ss:$8 sps:$4 sm:$0xff]  }
  0xbc   :  { %2501 = vmatprep.subr.bf16.mxu1 %v3403_v39  ;;  %v3574_v38 = vld [vmem:[#allocation2 + $0x34] ss:$80 sps:$4 sm:$0xff]   ;;  %v3577_v39 = vld [vmem:[#allocation2 + $0x3c] ss:$80 sps:$4 sm:$0xff]  }
  0xbe   :  { %2449 = vmatpush1.bf16.msra.mxu0 %v3398_v40  ;;  %v3494_v40 = vld [vmem:[#allocation5 + $0x640] ss:$8 sps:$4 sm:$0xff]  }
  0xbf   :  { %2502 = vmatpush1.bf16.msra.mxu1 %v3401_v41  ;;  %2450 = vmatprep.subr.bf16.mxu0 %v3406_v42  ;;  %v3497_v41 = vld [vmem:[#allocation5 + $0x740] ss:$8 sps:$4 sm:$0xff]   ;;  %v3502_v42 = vld [vmem:[#allocation5 + $0x634] ss:$8 sps:$4 sm:$0xff]  }
  0xc0   :  { %2503 = vmatprep.subr.bf16.mxu1 %v3409_v43  ;;  %v3505_v43 = vld [vmem:[#allocation5 + $0x734] ss:$8 sps:$4 sm:$0xff]  }
  0xc2   :  { %2451 = vmatpush1.bf16.msra.mxu0 %v3404_v44  ;;  %v3500_v44 = vld [vmem:[#allocation5 + $0x630] ss:$8 sps:$4 sm:$0xff]  }
  0xc3   :  { %2504 = vmatpush1.bf16.msra.mxu1 %v3407_v45  ;;  %2452 = vmatprep.subr.bf16.mxu0 %v3412_v46  ;;  %v3503_v45 = vld [vmem:[#allocation5 + $0x730] ss:$8 sps:$4 sm:$0xff]   ;;  %v3508_v46 = vld [vmem:[#allocation5 + $0x624] ss:$8 sps:$4 sm:$0xff]  }
  0xc4   :  { %2505 = vmatprep.subr.bf16.mxu1 %v3415_v47  ;;  %v3511_v47 = vld [vmem:[#allocation5 + $0x724] ss:$8 sps:$4 sm:$0xff]  }
  0xc6   :  { %2453 = vmatpush1.bf16.msra.mxu0 %v3410_v48  ;;  %v3506_v48 = vld [vmem:[#allocation5 + $0x620] ss:$8 sps:$4 sm:$0xff]  }
  0xc7   :  { %2506 = vmatpush1.bf16.msra.mxu1 %v3413_v49  ;;  %2454 = vmatprep.subr.bf16.mxu0 %v3418_v50  ;;  %v3509_v49 = vld [vmem:[#allocation5 + $0x720] ss:$8 sps:$4 sm:$0xff]   ;;  %v3514_v50 = vld [vmem:[#allocation5 + $0x614] ss:$8 sps:$4 sm:$0xff]  }
  0xc8   :  { %2507 = vmatprep.subr.bf16.mxu1 %v3421_v51  ;;  %v3517_v51 = vld [vmem:[#allocation5 + $0x714] ss:$8 sps:$4 sm:$0xff]  }
  0xca   :  { %2455 = vmatpush2.bf16.msra.mxu0 %v3416_v52  ;;  %v3512_v52 = vld [vmem:[#allocation5 + $0x610] ss:$8 sps:$4 sm:$0xff]  }
  0xcb   :  { %2508 = vmatpush2.bf16.msra.mxu1 %v3419_v53  ;;  %2456 = vmatprep.subr.bf16.mxu0 %v3424_v54  ;;  %v3515_v53 = vld [vmem:[#allocation5 + $0x710] ss:$8 sps:$4 sm:$0xff]   ;;  %v3520_v54 = vld [vmem:[#allocation5 + $0x604] ss:$8 sps:$4 sm:$0xff]  }
  0xcc   :  { %2509 = vmatprep.subr.bf16.mxu1 %v3427_v55  ;;  %v3523_v55 = vld [vmem:[#allocation5 + $0x704] ss:$8 sps:$4 sm:$0xff]  }
  0xce   :  { %2457 = vmatpush2.bf16.msra.mxu0 %v3422_v56  ;;  %v3518_v56 = vld [vmem:[#allocation5 + $0x600] ss:$8 sps:$4 sm:$0xff]  }
  0xcf   :  { %2510 = vmatpush2.bf16.msra.mxu1 %v3425_v57  ;;  %2458 = vmatprep.subr.bf16.mxu0 %v3430_v58  ;;  %v3521_v57 = vld [vmem:[#allocation5 + $0x700] ss:$8 sps:$4 sm:$0xff]   ;;  %v3526_v58 = vld [vmem:[#allocation5 + $0x6f4] ss:$8 sps:$4 sm:$0xff]  }
  0xd0   :  { %2511 = vmatprep.subr.bf16.mxu1 %v3433_v59  ;;  %v3529_v59 = vld [vmem:[#allocation5 + $0x7f4] ss:$8 sps:$4 sm:$0xff]  }
  0xd2   :  { %2459 = vmatpush2.bf16.msra.mxu0 %v3428_v60  ;;  %v3524_v60 = vld [vmem:[#allocation5 + $0x6f0] ss:$8 sps:$4 sm:$0xff]  }
  0xd3   :  { %2512 = vmatpush2.bf16.msra.mxu1 %v3431_v61  ;;  %2460 = vmatprep.subr.bf16.mxu0 %v3436_v62  ;;  %v3527_v61 = vld [vmem:[#allocation5 + $0x7f0] ss:$8 sps:$4 sm:$0xff]   ;;  %v3532_v62 = vld [vmem:[#allocation5 + $0x6e4] ss:$8 sps:$4 sm:$0xff]  }
  0xd4   :  { %2513 = vmatprep.subr.bf16.mxu1 %v3439_v63  ;;  %v3535_v63 = vld [vmem:[#allocation5 + $0x7e4] ss:$8 sps:$4 sm:$0xff]  }
  0xd6   :  { %2461 = vmatpush2.bf16.msra.mxu0 %v3434_v0  ;;  %v3530_v0 = vld [vmem:[#allocation5 + $0x6e0] ss:$8 sps:$4 sm:$0xff]  }
  0xd7   :  { %2514 = vmatpush2.bf16.msra.mxu1 %v3437_v1  ;;  %2462 = vmatprep.subr.bf16.mxu0 %v3442_v2  ;;  %v3533_v1 = vld [vmem:[#allocation5 + $0x7e0] ss:$8 sps:$4 sm:$0xff]   ;;  %v3538_v2 = vld [vmem:[#allocation5 + $0x6d4] ss:$8 sps:$4 sm:$0xff]  }
  0xd8   :  { %2515 = vmatprep.subr.bf16.mxu1 %v3445_v3  ;;  %v3541_v3 = vld [vmem:[#allocation5 + $0x7d4] ss:$8 sps:$4 sm:$0xff]  }
  0xda   :  { %2463 = vmatpush2.bf16.msra.mxu0 %v3440_v4  ;;  %v3536_v4 = vld [vmem:[#allocation5 + $0x6d0] ss:$8 sps:$4 sm:$0xff]  }
  0xdb   :  { %2516 = vmatpush2.bf16.msra.mxu1 %v3443_v5  ;;  %2464 = vmatprep.subr.bf16.mxu0 %v3448_v6  ;;  %v3539_v5 = vld [vmem:[#allocation5 + $0x7d0] ss:$8 sps:$4 sm:$0xff]   ;;  %v3544_v6 = vld [vmem:[#allocation5 + $0x6c4] ss:$8 sps:$4 sm:$0xff]  }
  0xdc   :  { %2517 = vmatprep.subr.bf16.mxu1 %v3451_v7  ;;  %v3547_v7 = vld [vmem:[#allocation5 + $0x7c4] ss:$8 sps:$4 sm:$0xff]  }
  0xde   :  { %2465 = vmatpush2.bf16.msra.mxu0 %v3446_v8  ;;  %v3542_v8 = vld [vmem:[#allocation5 + $0x6c0] ss:$8 sps:$4 sm:$0xff]  }
  0xdf   :  { %2518 = vmatpush2.bf16.msra.mxu1 %v3449_v9  ;;  %2466 = vmatprep.subr.bf16.mxu0 %v3454_v10  ;;  %v3545_v9 = vld [vmem:[#allocation5 + $0x7c0] ss:$8 sps:$4 sm:$0xff]   ;;  %v3550_v10 = vld [vmem:[#allocation5 + $0x6b4] ss:$8 sps:$4 sm:$0xff]  }
  0xe0   :  { %2519 = vmatprep.subr.bf16.mxu1 %v3457_v11  ;;  %v3553_v11 = vld [vmem:[#allocation5 + $0x7b4] ss:$8 sps:$4 sm:$0xff]  }
  0xe2   :  { %2467 = vmatpush2.bf16.msra.mxu0 %v3452_v12  ;;  %v3548_v12 = vld [vmem:[#allocation5 + $0x6b0] ss:$8 sps:$4 sm:$0xff]  }
  0xe3   :  { %2520 = vmatpush2.bf16.msra.mxu1 %v3455_v13  ;;  %2468 = vmatprep.subr.bf16.mxu0 %v3460_v14  ;;  %v3551_v13 = vld [vmem:[#allocation5 + $0x7b0] ss:$8 sps:$4 sm:$0xff]   ;;  %v3556_v14 = vld [vmem:[#allocation5 + $0x6a4] ss:$8 sps:$4 sm:$0xff]  }
  0xe4   :  { %2521 = vmatprep.subr.bf16.mxu1 %v3463_v15  ;;  %v3559_v15 = vld [vmem:[#allocation5 + $0x7a4] ss:$8 sps:$4 sm:$0xff]  }
  0xe6   :  { %2469 = vmatpush2.bf16.msra.mxu0 %v3458_v16  ;;  %v3554_v16 = vld [vmem:[#allocation5 + $0x6a0] ss:$8 sps:$4 sm:$0xff]  }
  0xe7   :  { %2522 = vmatpush2.bf16.msra.mxu1 %v3461_v17  ;;  %2544 = vmatprep.subr.bf16.mxu0 %v3472_v18  ;;  %v3557_v17 = vld [vmem:[#allocation5 + $0x7a0] ss:$8 sps:$4 sm:$0xff]   ;;  %v3562_v18 = vld [vmem:[#allocation5 + $0x694] ss:$8 sps:$4 sm:$0xff]  }
  0xe8   :  { %2597 = vmatprep.subr.bf16.mxu1 %v3475_v19  ;;  %v3565_v19 = vld [vmem:[#allocation5 + $0x794] ss:$8 sps:$4 sm:$0xff]  }
  0xe9   :  { %2471 = vmatmul.mubr.bf16.vlgmr.msra.gmra.mxu0 %v3464_v20  ;;  %v3560_v20 = vld [vmem:[#allocation5 + $0x690] ss:$8 sps:$4 sm:$0xff]  }
  0xea   :  { %2524 = vmatmul.mubr.bf16.vlgmr.msra.gmra.mxu1 %v3467_v21  ;;  %2545 = vmatpush1.bf16.msra.mxu0 %v3470_v22  ;;  %v3563_v21 = vld [vmem:[#allocation5 + $0x790] ss:$8 sps:$4 sm:$0xff]   ;;  %v3568_v22 = vld [vmem:[#allocation5 + $0x684] ss:$8 sps:$4 sm:$0xff]  }
  0xeb   :  { %2598 = vmatpush1.bf16.msra.mxu1 %v3473_v23  ;;  %2546 = vmatprep.subr.bf16.mxu0 %v3478_v24  ;;  %v3571_v23 = vld [vmem:[#allocation5 + $0x784] ss:$8 sps:$4 sm:$0xff]   ;;  %v3566_v24 = vld [vmem:[#allocation5 + $0x680] ss:$8 sps:$4 sm:$0xff]  }
  0xec   :  { %2599 = vmatprep.subr.bf16.mxu1 %v3481_v25  ;;  %2480 = vmatprep.mubr.bf16.mxu0 %v3482_v26  ;;  %v3569_v25 = vld [vmem:[#allocation5 + $0x780] ss:$8 sps:$4 sm:$0xff]   ;;  %v3580_v26 = vld [vmem:[#allocation5 + $0x874] ss:$8 sps:$4 sm:$0xff]  }
  0xed   :  { %2533 = vmatprep.mubr.bf16.mxu1 %v3491_v27  ;;  %v3583_v27 = vld [vmem:[#allocation5 + $0x974] ss:$8 sps:$4 sm:$0xff]  }
  0xee   :  { %2547 = vmatpush1.bf16.msra.mxu0 %v3476_v28  ;;  %v3572_v28 = vld [vmem:[#allocation2 + $0x30] ss:$80 sps:$4 sm:$0xff]  }
  0xef   :  { %2600 = vmatpush1.bf16.msra.mxu1 %v3479_v29  ;;  %2548 = vmatprep.subr.bf16.mxu0 %v3487_v30  ;;  %v3575_v29 = vld [vmem:[#allocation2 + $0x38] ss:$80 sps:$4 sm:$0xff]  }
  0xf0   :  { %2601 = vmatprep.subr.bf16.mxu1 %v3490_v31  ;;  %v3578_v30 = vld [vmem:[#allocation5 + $0x870] ss:$8 sps:$4 sm:$0xff]  }
  0xf1   :  { %2481 = vmatmul.mubr.bf16.gmra.mxu0 %v3484_v32  ;;  %v3581_v31 = vld [vmem:[#allocation5 + $0x970] ss:$8 sps:$4 sm:$0xff]   ;;  %v3586_v32 = vld [vmem:[#allocation5 + $0x864] ss:$8 sps:$4 sm:$0xff]  }
  0xf2   :  { %2534 = vmatmul.mubr.bf16.gmra.mxu1 %v3493_v34  ;;  %2549 = vmatpush1.bf16.msra.mxu0 %v3485_v33  ;;  %v3589_v33 = vld [vmem:[#allocation5 + $0x964] ss:$8 sps:$4 sm:$0xff]  }
  0xf3   :  { %2602 = vmatpush1.bf16.msra.mxu1 %v3488_v35  ;;  %2550 = vmatprep.subr.bf16.mxu0 %v3496_v36  ;;  %v3590_v34 = vld [vmem:[#allocation2 + $0xd4] ss:$80 sps:$4 sm:$0xff]   ;;  %v3599_v35 = vld [vmem:[#allocation2 + $0xdc] ss:$80 sps:$4 sm:$0xff]   ;;  %v3584_v36 = vld [vmem:[#allocation5 + $0x860] ss:$8 sps:$4 sm:$0xff]  }
  0xf4   :  { %2603 = vmatprep.subr.bf16.mxu1 %v3499_v37  ;;  %2576 = vmatprep.mubr.bf16.mxu0 %v3574_v38  ;;  %v3587_v37 = vld [vmem:[#allocation5 + $0x960] ss:$8 sps:$4 sm:$0xff]   ;;  %v3595_v38 = vld [vmem:[#allocation5 + $0x854] ss:$8 sps:$4 sm:$0xff]  }
  0xf5   :  { %2629 = vmatprep.mubr.bf16.mxu1 %v3577_v39  ;;  %v3598_v39 = vld [vmem:[#allocation5 + $0x954] ss:$8 sps:$4 sm:$0xff]  }
  0xf6   :  { %2551 = vmatpush1.bf16.msra.mxu0 %v3494_v40  ;;  %v3592_v40 = vld [vmem:[#allocation2 + $0xd0] ss:$80 sps:$4 sm:$0xff]  }
  0xf7   :  { %2604 = vmatpush1.bf16.msra.mxu1 %v3497_v41  ;;  %2552 = vmatprep.subr.bf16.mxu0 %v3502_v42  ;;  %v3601_v41 = vld [vmem:[#allocation2 + $0xd8] ss:$80 sps:$4 sm:$0xff]  }
  0xf8   :  { %2605 = vmatprep.subr.bf16.mxu1 %v3505_v43  ;;  %v3593_v42 = vld [vmem:[#allocation5 + $0x850] ss:$8 sps:$4 sm:$0xff]  }
  0xf9   :  { %v3596_v43 = vld [vmem:[#allocation5 + $0x950] ss:$8 sps:$4 sm:$0xff]  }
  0xfa   :  { %2553 = vmatpush1.bf16.msra.mxu0 %v3500_v44  ;;  %v3604_v44 = vld [vmem:[#allocation5 + $0x844] ss:$8 sps:$4 sm:$0xff]  }
  0xfb   :  { %2606 = vmatpush1.bf16.msra.mxu1 %v3503_v45  ;;  %2554 = vmatprep.subr.bf16.mxu0 %v3508_v46  ;;  %v3607_v45 = vld [vmem:[#allocation5 + $0x944] ss:$8 sps:$4 sm:$0xff]  }
  0xfc   :  { %2607 = vmatprep.subr.bf16.mxu1 %v3511_v47  ;;  %v3682_v46 = vld [vmem:[#allocation2 + $0x44] ss:$80 sps:$4 sm:$0xff]   ;;  %v3685_v47 = vld [vmem:[#allocation2 + $0x4c] ss:$80 sps:$4 sm:$0xff]  }
  0xfe   :  { %2555 = vmatpush1.bf16.msra.mxu0 %v3506_v48  ;;  %v3602_v48 = vld [vmem:[#allocation5 + $0x840] ss:$8 sps:$4 sm:$0xff]  }
  0xff   :  { %2608 = vmatpush1.bf16.msra.mxu1 %v3509_v49  ;;  %2556 = vmatprep.subr.bf16.mxu0 %v3514_v50  ;;  %v3605_v49 = vld [vmem:[#allocation5 + $0x940] ss:$8 sps:$4 sm:$0xff]   ;;  %v3610_v50 = vld [vmem:[#allocation5 + $0x834] ss:$8 sps:$4 sm:$0xff]  }
 0x100   :  { %2609 = vmatprep.subr.bf16.mxu1 %v3517_v51  ;;  %v3613_v51 = vld [vmem:[#allocation5 + $0x934] ss:$8 sps:$4 sm:$0xff]  }
 0x102   :  { %2557 = vmatpush1.bf16.msra.mxu0 %v3512_v52  ;;  %v3608_v52 = vld [vmem:[#allocation5 + $0x830] ss:$8 sps:$4 sm:$0xff]  }
 0x103   :  { %2610 = vmatpush1.bf16.msra.mxu1 %v3515_v53  ;;  %2558 = vmatprep.subr.bf16.mxu0 %v3520_v54  ;;  %v3611_v53 = vld [vmem:[#allocation5 + $0x930] ss:$8 sps:$4 sm:$0xff]   ;;  %v3616_v54 = vld [vmem:[#allocation5 + $0x824] ss:$8 sps:$4 sm:$0xff]  }
 0x104   :  { %2611 = vmatprep.subr.bf16.mxu1 %v3523_v55  ;;  %v3619_v55 = vld [vmem:[#allocation5 + $0x924] ss:$8 sps:$4 sm:$0xff]  }
 0x106   :  { %2559 = vmatpush1.bf16.msra.mxu0 %v3518_v56  ;;  %v3614_v56 = vld [vmem:[#allocation5 + $0x820] ss:$8 sps:$4 sm:$0xff]  }
 0x107   :  { %2612 = vmatpush1.bf16.msra.mxu1 %v3521_v57  ;;  %2560 = vmatprep.subr.bf16.mxu0 %v3526_v58  ;;  %v3617_v57 = vld [vmem:[#allocation5 + $0x920] ss:$8 sps:$4 sm:$0xff]   ;;  %v3622_v58 = vld [vmem:[#allocation5 + $0x814] ss:$8 sps:$4 sm:$0xff]  }
 0x108   :  { %2613 = vmatprep.subr.bf16.mxu1 %v3529_v59  ;;  %v3625_v59 = vld [vmem:[#allocation5 + $0x914] ss:$8 sps:$4 sm:$0xff]  }
 0x10a   :  { %2561 = vmatpush2.bf16.msra.mxu0 %v3524_v60  ;;  %v3620_v60 = vld [vmem:[#allocation5 + $0x810] ss:$8 sps:$4 sm:$0xff]  }
 0x10b   :  { %2614 = vmatpush2.bf16.msra.mxu1 %v3527_v61  ;;  %2562 = vmatprep.subr.bf16.mxu0 %v3532_v62  ;;  %v3623_v61 = vld [vmem:[#allocation5 + $0x910] ss:$8 sps:$4 sm:$0xff]   ;;  %v3628_v62 = vld [vmem:[#allocation5 + $0x804] ss:$8 sps:$4 sm:$0xff]  }
 0x10c   :  { %2615 = vmatprep.subr.bf16.mxu1 %v3535_v63  ;;  %v3631_v63 = vld [vmem:[#allocation5 + $0x904] ss:$8 sps:$4 sm:$0xff]  }
 0x10e   :  { %2563 = vmatpush2.bf16.msra.mxu0 %v3530_v0  ;;  %v3626_v0 = vld [vmem:[#allocation5 + $0x800] ss:$8 sps:$4 sm:$0xff]  }
 0x10f   :  { %2616 = vmatpush2.bf16.msra.mxu1 %v3533_v1  ;;  %2564 = vmatprep.subr.bf16.mxu0 %v3538_v2  ;;  %v3629_v1 = vld [vmem:[#allocation5 + $0x900] ss:$8 sps:$4 sm:$0xff]   ;;  %v3634_v2 = vld [vmem:[#allocation5 + $0x8f4] ss:$8 sps:$4 sm:$0xff]  }
 0x110   :  { %2617 = vmatprep.subr.bf16.mxu1 %v3541_v3  ;;  %v3637_v3 = vld [vmem:[#allocation5 + $0x9f4] ss:$8 sps:$4 sm:$0xff]  }
 0x112   :  { %2565 = vmatpush2.bf16.msra.mxu0 %v3536_v4  ;;  %v3632_v4 = vld [vmem:[#allocation5 + $0x8f0] ss:$8 sps:$4 sm:$0xff]  }
 0x113   :  { %2618 = vmatpush2.bf16.msra.mxu1 %v3539_v5  ;;  %2566 = vmatprep.subr.bf16.mxu0 %v3544_v6  ;;  %v3635_v5 = vld [vmem:[#allocation5 + $0x9f0] ss:$8 sps:$4 sm:$0xff]   ;;  %v3640_v6 = vld [vmem:[#allocation5 + $0x8e4] ss:$8 sps:$4 sm:$0xff]  }
 0x114   :  { %2619 = vmatprep.subr.bf16.mxu1 %v3547_v7  ;;  %v3643_v7 = vld [vmem:[#allocation5 + $0x9e4] ss:$8 sps:$4 sm:$0xff]  }
 0x116   :  { %2567 = vmatpush2.bf16.msra.mxu0 %v3542_v8  ;;  %v3638_v8 = vld [vmem:[#allocation5 + $0x8e0] ss:$8 sps:$4 sm:$0xff]  }
 0x117   :  { %2620 = vmatpush2.bf16.msra.mxu1 %v3545_v9  ;;  %2568 = vmatprep.subr.bf16.mxu0 %v3550_v10  ;;  %v3641_v9 = vld [vmem:[#allocation5 + $0x9e0] ss:$8 sps:$4 sm:$0xff]   ;;  %v3646_v10 = vld [vmem:[#allocation5 + $0x8d4] ss:$8 sps:$4 sm:$0xff]  }
 0x118   :  { %2621 = vmatprep.subr.bf16.mxu1 %v3553_v11  ;;  %v3649_v11 = vld [vmem:[#allocation5 + $0x9d4] ss:$8 sps:$4 sm:$0xff]  }
 0x11a   :  { %2569 = vmatpush2.bf16.msra.mxu0 %v3548_v12  ;;  %v3644_v12 = vld [vmem:[#allocation5 + $0x8d0] ss:$8 sps:$4 sm:$0xff]  }
 0x11b   :  { %2622 = vmatpush2.bf16.msra.mxu1 %v3551_v13  ;;  %2570 = vmatprep.subr.bf16.mxu0 %v3556_v14  ;;  %v3647_v13 = vld [vmem:[#allocation5 + $0x9d0] ss:$8 sps:$4 sm:$0xff]   ;;  %v3652_v14 = vld [vmem:[#allocation5 + $0x8c4] ss:$8 sps:$4 sm:$0xff]  }
 0x11c   :  { %2623 = vmatprep.subr.bf16.mxu1 %v3559_v15  ;;  %v3655_v15 = vld [vmem:[#allocation5 + $0x9c4] ss:$8 sps:$4 sm:$0xff]  }
 0x11e   :  { %2571 = vmatpush2.bf16.msra.mxu0 %v3554_v16  ;;  %v3650_v16 = vld [vmem:[#allocation5 + $0x8c0] ss:$8 sps:$4 sm:$0xff]  }
 0x11f   :  { %2624 = vmatpush2.bf16.msra.mxu1 %v3557_v17  ;;  %2572 = vmatprep.subr.bf16.mxu0 %v3562_v18  ;;  %v3653_v17 = vld [vmem:[#allocation5 + $0x9c0] ss:$8 sps:$4 sm:$0xff]   ;;  %v3658_v18 = vld [vmem:[#allocation5 + $0x8b4] ss:$8 sps:$4 sm:$0xff]  }
 0x120   :  { %2625 = vmatprep.subr.bf16.mxu1 %v3565_v19  ;;  %v3661_v19 = vld [vmem:[#allocation5 + $0x9b4] ss:$8 sps:$4 sm:$0xff]  }
 0x122   :  { %2573 = vmatpush2.bf16.msra.mxu0 %v3560_v20  ;;  %v3656_v20 = vld [vmem:[#allocation5 + $0x8b0] ss:$8 sps:$4 sm:$0xff]  }
 0x123   :  { %2626 = vmatpush2.bf16.msra.mxu1 %v3563_v21  ;;  %2574 = vmatprep.subr.bf16.mxu0 %v3568_v22  ;;  %v3659_v21 = vld [vmem:[#allocation5 + $0x9b0] ss:$8 sps:$4 sm:$0xff]   ;;  %v3664_v22 = vld [vmem:[#allocation5 + $0x8a4] ss:$8 sps:$4 sm:$0xff]  }
 0x124   :  { %2627 = vmatprep.subr.bf16.mxu1 %v3571_v23  ;;  %v3667_v23 = vld [vmem:[#allocation5 + $0x9a4] ss:$8 sps:$4 sm:$0xff]  }
 0x126   :  { %2575 = vmatpush2.bf16.msra.mxu0 %v3566_v24  ;;  %v3662_v24 = vld [vmem:[#allocation5 + $0x8a0] ss:$8 sps:$4 sm:$0xff]  }
 0x127   :  { %2628 = vmatpush2.bf16.msra.mxu1 %v3569_v25  ;;  %2650 = vmatprep.subr.bf16.mxu0 %v3580_v26  ;;  %v3665_v25 = vld [vmem:[#allocation5 + $0x9a0] ss:$8 sps:$4 sm:$0xff]   ;;  %v3670_v26 = vld [vmem:[#allocation5 + $0x894] ss:$8 sps:$4 sm:$0xff]  }
 0x128   :  { %2703 = vmatprep.subr.bf16.mxu1 %v3583_v27  ;;  %v3673_v27 = vld [vmem:[#allocation5 + $0x994] ss:$8 sps:$4 sm:$0xff]  }
 0x129   :  { %2577 = vmatmul.mubr.bf16.vlgmr.msra.gmra.mxu0 %v3572_v28  ;;  %v3668_v28 = vld [vmem:[#allocation5 + $0x890] ss:$8 sps:$4 sm:$0xff]  }
 0x12a   :  { %2630 = vmatmul.mubr.bf16.vlgmr.msra.gmra.mxu1 %v3575_v29  ;;  %2651 = vmatpush1.bf16.msra.mxu0 %v3578_v30  ;;  %v3671_v29 = vld [vmem:[#allocation5 + $0x990] ss:$8 sps:$4 sm:$0xff]   ;;  %v3676_v30 = vld [vmem:[#allocation5 + $0x884] ss:$8 sps:$4 sm:$0xff]  }
 0x12b   :  { %2704 = vmatpush1.bf16.msra.mxu1 %v3581_v31  ;;  %2652 = vmatprep.subr.bf16.mxu0 %v3586_v32  ;;  %v3679_v31 = vld [vmem:[#allocation5 + $0x984] ss:$8 sps:$4 sm:$0xff]   ;;  %v3674_v32 = vld [vmem:[#allocation5 + $0x880] ss:$8 sps:$4 sm:$0xff]  }
 0x12c   :  { %2705 = vmatprep.subr.bf16.mxu1 %v3589_v33  ;;  %2586 = vmatprep.mubr.bf16.mxu0 %v3590_v34  ;;  %v3677_v33 = vld [vmem:[#allocation5 + $0x980] ss:$8 sps:$4 sm:$0xff]  }
 0x12d   :  { %2639 = vmatprep.mubr.bf16.mxu1 %v3599_v35  ;;  %v3680_v34 = vld [vmem:[#allocation2 + $0x40] ss:$80 sps:$4 sm:$0xff]   ;;  %v3683_v35 = vld [vmem:[#allocation2 + $0x48] ss:$80 sps:$4 sm:$0xff]  }
 0x12e   :  { %2653 = vmatpush1.bf16.msra.mxu0 %v3584_v36  ;;  %v3686_v36 = vld [vmem:[#allocation2 + $0xe4] ss:$80 sps:$4 sm:$0xff]  }
 0x12f   :  { %2706 = vmatpush1.bf16.msra.mxu1 %v3587_v37  ;;  %2654 = vmatprep.subr.bf16.mxu0 %v3595_v38  ;;  %v3688_v37 = vld [vmem:[#allocation2 + $0xec] ss:$80 sps:$4 sm:$0xff]   ;;  %v3690_v38 = vld [vmem:[#allocation2 + $0xe0] ss:$80 sps:$4 sm:$0xff]  }
 0x130   :  { %2707 = vmatprep.subr.bf16.mxu1 %v3598_v39  ;;  %v3691_v39 = vld [vmem:[#allocation2 + $0xe8] ss:$80 sps:$4 sm:$0xff]  }
 0x131   :  { %2587 = vmatmul.mubr.bf16.gmra.mxu0 %v3592_v40  ;;  %v2260_v40 = vpop.f32.mrf.mxu0 }
 0x132   :  { %2640 = vmatmul.mubr.bf16.gmra.mxu1 %v3601_v41  ;;  %2655 = vmatpush1.bf16.msra.mxu0 %v3593_v42  ;;  %v2313_v42 = vpop.f32.mrf.mxu1 }
 0x133   :  { %2708 = vmatpush1.bf16.msra.mxu1 %v3596_v43  ;;  %2656 = vmatprep.subr.bf16.mxu0 %v3604_v44  ;;  %v2262_v41 = vpop.f32.mrf.mxu0 }
 0x134   :  { %2709 = vmatprep.subr.bf16.mxu1 %v3607_v45  ;;  %2682 = vmatprep.mubr.bf16.mxu0 %v3682_v46  ;;  %v2315_v44 = vpop.f32.mrf.mxu1 }
 0x135   :  { %2735 = vmatprep.mubr.bf16.mxu1 %v3685_v47  ;;  %v2264_v43 = vpop.f32.mrf.mxu0 }
 0x136   :  { %2657 = vmatpush1.bf16.msra.mxu0 %v3602_v48  ;;  %v3817_v46 = vpop.f32.mrf.mxu1 }
 0x137   :  { %2710 = vmatpush1.bf16.msra.mxu1 %v3605_v49  ;;  %2658 = vmatprep.subr.bf16.mxu0 %v3610_v50  ;;  %v2266_v45 = vpop.f32.mrf.mxu0 }
 0x138   :  { %2711 = vmatprep.subr.bf16.mxu1 %v3613_v51  ;;  %v3821_v48 = vpop.f32.mrf.mxu1 }
 0x139   :  { %v3819_v47 = vpop.f32.mrf.mxu0 }
 0x13a   :  { %2659 = vmatpush1.bf16.msra.mxu0 %v3608_v52  ;;  %v3825_v50 = vpop.f32.mrf.mxu1 }
 0x13b   :  { %2712 = vmatpush1.bf16.msra.mxu1 %v3611_v53  ;;  %2660 = vmatprep.subr.bf16.mxu0 %v3616_v54  ;;  %v3823_v49 = vpop.f32.mrf.mxu0 }
 0x13c   :  { %2713 = vmatprep.subr.bf16.mxu1 %v3619_v55  ;;  %v3829_v52 = vpop.f32.mrf.mxu1 }
 0x13d   :  { %v3827_v51 = vpop.f32.mrf.mxu0 }
 0x13e   :  { %2661 = vmatpush1.bf16.msra.mxu0 %v3614_v56  ;;  %v3833_v54 = vpop.f32.mrf.mxu1 }
 0x13f   :  { %2714 = vmatpush1.bf16.msra.mxu1 %v3617_v57  ;;  %2662 = vmatprep.subr.bf16.mxu0 %v3622_v58  ;;  %v3831_v53 = vpop.f32.mrf.mxu0 }
 0x140   :  { %2715 = vmatprep.subr.bf16.mxu1 %v3625_v59  ;;  %v3835_v56 = vpop.f32.mrf.mxu1 }
 0x142   :  { %2663 = vmatpush1.bf16.msra.mxu0 %v3620_v60 }
 0x143   :  { %2716 = vmatpush1.bf16.msra.mxu1 %v3623_v61  ;;  %2664 = vmatprep.subr.bf16.mxu0 %v3628_v62 }
 0x144   :  { %2717 = vmatprep.subr.bf16.mxu1 %v3631_v63 }
 0x146   :  { %2665 = vmatpush1.bf16.msra.mxu0 %v3626_v0 }
 0x147   :  { %2718 = vmatpush1.bf16.msra.mxu1 %v3629_v1  ;;  %2666 = vmatprep.subr.bf16.mxu0 %v3634_v2 }
 0x148   :  { %2719 = vmatprep.subr.bf16.mxu1 %v3637_v3 }
 0x14a   :  { %2667 = vmatpush2.bf16.msra.mxu0 %v3632_v4 }
 0x14b   :  { %2720 = vmatpush2.bf16.msra.mxu1 %v3635_v5  ;;  %2668 = vmatprep.subr.bf16.mxu0 %v3640_v6 }
 0x14c   :  { %2721 = vmatprep.subr.bf16.mxu1 %v3643_v7 }
 0x14e   :  { %2669 = vmatpush2.bf16.msra.mxu0 %v3638_v8 }
 0x14f   :  { %2722 = vmatpush2.bf16.msra.mxu1 %v3641_v9  ;;  %2670 = vmatprep.subr.bf16.mxu0 %v3646_v10 }
 0x150   :  { %2723 = vmatprep.subr.bf16.mxu1 %v3649_v11 }
 0x152   :  { %2671 = vmatpush2.bf16.msra.mxu0 %v3644_v12 }
 0x153   :  { %2724 = vmatpush2.bf16.msra.mxu1 %v3647_v13  ;;  %2672 = vmatprep.subr.bf16.mxu0 %v3652_v14 }
 0x154   :  { %2725 = vmatprep.subr.bf16.mxu1 %v3655_v15 }
 0x156   :  { %2673 = vmatpush2.bf16.msra.mxu0 %v3650_v16 }
 0x157   :  { %2726 = vmatpush2.bf16.msra.mxu1 %v3653_v17  ;;  %2674 = vmatprep.subr.bf16.mxu0 %v3658_v18 }
 0x158   :  { %2727 = vmatprep.subr.bf16.mxu1 %v3661_v19  ;;  %v416_v19 = vlaneseq }
 0x15a   :  { %2675 = vmatpush2.bf16.msra.mxu0 %v3656_v20 }
 0x15b   :  { %2728 = vmatpush2.bf16.msra.mxu1 %v3659_v21  ;;  %2676 = vmatprep.subr.bf16.mxu0 %v3664_v22  ;;  %v417_v22 = vshrl.u32 %v416_v19, 7 }
 0x15c   :  { %2729 = vmatprep.subr.bf16.mxu1 %v3667_v23 }
 0x15e   :  { %2677 = vmatpush2.bf16.msra.mxu0 %v3662_v24 }
 0x15f   :  { %2730 = vmatpush2.bf16.msra.mxu1 %v3665_v25  ;;  %2678 = vmatprep.subr.bf16.mxu0 %v3670_v26  ;;  %v418_v25 = vsub.s32 0, %v417_v22  ;;  %v414_v26 = vld [vmem:[#allocation7] sm:$0x3] }
 0x160   :  { %2731 = vmatprep.subr.bf16.mxu1 %v3673_v27 }
 0x162   :  { %2679 = vmatpush2.bf16.msra.mxu0 %v3668_v28 }
 0x163   :  { %2732 = vmatpush2.bf16.msra.mxu1 %v3671_v29  ;;  %2680 = vmatprep.subr.bf16.mxu0 %v3676_v30  ;;  %v422_v29 = vsub.s32 1, %v417_v22 }
 0x164   :  { %2733 = vmatprep.subr.bf16.mxu1 %v3679_v31  ;;  %v419_v31 = vrot.slane %v414_v26, %v418_v25 }
 0x166   :  { %2681 = vmatpush2.bf16.msra.mxu0 %v3674_v32  ;;  %v2265_v19 = vadd.f32 %v2264_v43, %v419_v31  ;;  %v2271_v25 = vadd.f32 %v3819_v47, %v419_v31 }
 0x167   :  { %2734 = vmatpush2.bf16.msra.mxu1 %v3677_v33  ;;  %v423_v33 = vrot.slane %v414_v26, %v422_v29 }
 0x168   :  { %v2318_v22 = vadd.f32 %v3817_v46, %v2265_v19 }
 0x169   :  { %2683 = vmatmul.mubr.bf16.vlgmr.msra.gmra.mxu0 %v3680_v34  ;;  %v2366_v55 = vpop.f32.mrf.mxu0  ;;  %v2273_v29 = vadd.f32 %v3823_v49, %v423_v33  ;;  %v2277_v47 = vadd.f32 %v3831_v53, %v423_v33 }
 0x16a   :  { %2736 = vmatmul.mubr.bf16.vlgmr.msra.gmra.mxu1 %v3683_v35  ;;  %2692 = vmatprep.mubr.bf16.mxu0 %v3686_v36  ;;  %v2419_v58 = vpop.f32.mrf.mxu1  ;;  %v2261_v35 = vadd.f32 %v2260_v40, %v419_v31 }
 0x16b   :  { %2745 = vmatprep.mubr.bf16.mxu1 %v3688_v37  ;;  %v2368_v57 = vpop.f32.mrf.mxu0  ;;  %v2263_v37 = vadd.f32 %v2262_v41, %v423_v33  ;;  %v2326_v46 = vadd.f32 %v3829_v52, %v2273_v29  ;;  %v2330_v52 = vadd.f32 %v3835_v56, %v2277_v47 }
 0x16c   :  { %v2421_v60 = vpop.f32.mrf.mxu1 }
 0x16d   :  { %v2370_v59 = vpop.f32.mrf.mxu0 }
 0x16e   :  { %v3837_v62 = vpop.f32.mrf.mxu1  ;;  %v2371_v43 = vadd.f32 %v2370_v59, %v2318_v22 }
 0x16f   :  { %v2372_v61 = vpop.f32.mrf.mxu0 }
 0x170   :  { %v3841_v0 = vpop.f32.mrf.mxu1 }
 0x171   :  { %2693 = vmatmul.mubr.bf16.gmra.mxu0 %v3690_v38  ;;  %v3839_v63 = vpop.f32.mrf.mxu0 }
 0x172   :  { %2746 = vmatmul.mubr.bf16.gmra.mxu1 %v3691_v39  ;;  %v3845_v2 = vpop.f32.mrf.mxu1  ;;  %v2314_v39 = vadd.f32 %v2313_v42, %v2261_v35 }
 0x173   :  { %v3843_v1 = vpop.f32.mrf.mxu0 }
 0x174   :  { %v3849_v4 = vpop.f32.mrf.mxu1 }
 0x175   :  { %v3847_v3 = vpop.f32.mrf.mxu0 }
 0x176   :  { %v3853_v6 = vpop.f32.mrf.mxu1 }
 0x177   :  { %v3851_v5 = vpop.f32.mrf.mxu0 }
 0x178   :  { %v3855_v8 = vpop.f32.mrf.mxu1 }
 0x1a9   :  { %v2472_v7 = vpop.f32.mrf.mxu0 }
 0x1aa   :  { %v2525_v9 = vpop.f32.mrf.mxu1 }
 0x1ab   :  { %v2474_v10 = vpop.f32.mrf.mxu0 }
 0x1ac   :  { %v3857_v11 = vpop.f32.mrf.mxu1 }
 0x1ad   :  { %v2476_v12 = vpop.f32.mrf.mxu0 }
 0x1ae   :  { %v3859_v13 = vpop.f32.mrf.mxu1 }
 0x1af   :  { %v3861_v14 = vpop.f32.mrf.mxu0 }
 0x1b0   :  { %v3863_v15 = vpop.f32.mrf.mxu1 }
 0x1b1   :  { %v3865_v16 = vpop.f32.mrf.mxu0 }
 0x1b2   :  { %v3867_v17 = vpop.f32.mrf.mxu1 }
 0x1b3   :  { %3935 = vst [vmem:[#allocation12_spill] sm:$0xff] %v3867_v17  ;;  %v3869_v18 = vpop.f32.mrf.mxu0  ;;  %v2367_v17 = vadd.f32 %v2366_v55, %v2314_v39 }
 0x1b4   :  { %v3871_v20 = vpop.f32.mrf.mxu1 }
 0x1b5   :  { %3936 = vst [vmem:[#allocation13_spill] sm:$0xff] %v3871_v20  ;;  %v3873_v21 = vpop.f32.mrf.mxu0  ;;  %v2267_v20 = vadd.f32 %v2266_v45, %v423_v33  ;;  %v2420_v42 = vadd.f32 %v2419_v58, %v2367_v17  ;;  %v2324_v45 = vadd.f32 %v3825_v50, %v2271_v25 }
 0x1b6   :  { %v3875_v23 = vpop.f32.mrf.mxu1 }
 0x1b7   :  { %3937 = vst [vmem:[#allocation14_spill] sm:$0xff] %v3875_v23  ;;  %v3877_v24 = vpop.f32.mrf.mxu0  ;;  %v2320_v41 = vadd.f32 %v3821_v48, %v2267_v20  ;;  %v2377_v48 = vadd.f32 %v3839_v63, %v2324_v45 }
 0x1b8   :  { %3938 = vst [vmem:[#allocation15_spill] sm:$0xff] %v3877_v24  ;;  %v3879_v27 = vpop.f32.mrf.mxu1  ;;  %v2316_v24 = vadd.f32 %v2315_v44, %v2263_v37  ;;  %v2275_v44 = vadd.f32 %v3827_v51, %v419_v31  ;;  %v2473_v37 = vadd.f32 %v2472_v7, %v2420_v42  ;;  %v2379_v51 = vadd.f32 %v3843_v1, %v2326_v46 }
 0x1b9   :  { %3939 = vst [vmem:[#allocation16_spill] sm:$0xff] %v3879_v27  ;;  %v2373_v35 = vadd.f32 %v2372_v61, %v2320_v41  ;;  %v2430_v20 = vadd.f32 %v3845_v2, %v2377_v48  ;;  %v2383_v1 = vadd.f32 %v3851_v5, %v2330_v52 }
 0x1ba   :  { %v2369_v26 = vadd.f32 %v2368_v57, %v2316_v24  ;;  %v2424_v24 = vadd.f32 %v3837_v62, %v2371_v43  ;;  %v2328_v59 = vadd.f32 %v3833_v54, %v2275_v44  ;;  %v2432_v54 = vadd.f32 %v3849_v4, %v2379_v51 }
 0x1bb   :  { %v2426_v50 = vadd.f32 %v3841_v0, %v2373_v35 }
 0x1bc   :  { %v2422_v55 = vadd.f32 %v2421_v60, %v2369_v26  ;;  %v2526_v60 = vadd.f32 %v2525_v9, %v2473_v37  ;;  %v2477_v61 = vadd.f32 %v2476_v12, %v2424_v24  ;;  %v2381_v53 = vadd.f32 %v3847_v3, %v2328_v59  ;;  %v3943_v25 = vld [vmem:[#allocation13_spill] sm:$0xff] }
 0x1bd   :  { %v2479_v63 = vadd.f32 %v3861_v14, %v2426_v50  ;;  %v2483_v9 = vadd.f32 %v3865_v16, %v2430_v20  ;;  %v2485_v12 = vadd.f32 %v3869_v18, %v2432_v54 }
 0x1be   :  { %v2475_v58 = vadd.f32 %v2474_v10, %v2422_v55  ;;  %v2530_v0 = vadd.f32 %v3859_v13, %v2477_v61  ;;  %v2434_v3 = vadd.f32 %v3853_v6, %v2381_v53  ;;  %v3941_v13 = vld [vmem:[#allocation12_spill] sm:$0xff] }
 0x1bf   :  { %v2536_v19 = vadd.f32 %v3941_v13, %v2483_v9  ;;  %v2538_v18 = vadd.f32 %v3943_v25, %v2485_v12  ;;  %v3944_v26 = vld [vmem:[#allocation15_spill] sm:$0xff] }
 0x1c0   :  { %v2528_v62 = vadd.f32 %v3857_v11, %v2475_v58  ;;  %v2532_v11 = vadd.f32 %v3863_v15, %v2479_v63  ;;  %v2487_v4 = vadd.f32 %v3873_v21, %v2434_v3  ;;  %v3945_v21 = vld [vmem:[#allocation14_spill] sm:$0xff]  ;;  %v3946_v46 = vld [vmem:[#allocation16_spill] sm:$0xff] }
 0x1c2   :  { %v2540_v43 = vadd.f32 %v3945_v21, %v2487_v4 }
 0x1e9   :  { %v2578_v28 = vpop.f32.mrf.mxu0 }
 0x1ea   :  { %v2631_v30 = vpop.f32.mrf.mxu1  ;;  %v2579_v10 = vadd.f32 %v2578_v28, %v2526_v60  ;;  %v2436_v28 = vadd.f32 %v3855_v8, %v2383_v1 }
 0x1eb   :  { %v2580_v32 = vpop.f32.mrf.mxu0 }
 0x1ec   :  { %v3881_v34 = vpop.f32.mrf.mxu1  ;;  %v2581_v56 = vadd.f32 %v2580_v32, %v2528_v62  ;;  %v2632_v33 = vadd.f32 %v2631_v30, %v2579_v10  ;;  %v2489_v29 = vadd.f32 %v3944_v26, %v2436_v28 }
 0x1ed   :  { %3940 = vst [vmem:[#allocation17_spill] sm:$0xff] %v3881_v34  ;;  %v2582_v36 = vpop.f32.mrf.mxu0 }
 0x1ee   :  { %v3883_v38 = vpop.f32.mrf.mxu1  ;;  %v2583_v14 = vadd.f32 %v2582_v36, %v2530_v0  ;;  %v2542_v47 = vadd.f32 %v3946_v46, %v2489_v29 }
 0x1ef   :  { %v2584_v23 = vpop.f32.mrf.mxu0 }
 0x1f0   :  { %v3885_v27 = vpop.f32.mrf.mxu1  ;;  %v2585_v22 = vadd.f32 %v2584_v23, %v2532_v11  ;;  %v2636_v30 = vadd.f32 %v3883_v38, %v2583_v14 }
 0x1f1   :  { %v2588_v40 = vpop.f32.mrf.mxu0 }
 0x1f2   :  { %v3890_v34 = vpop.f32.mrf.mxu1  ;;  %v2589_v36 = vadd.f32 %v2588_v40, %v2536_v19  ;;  %v2638_v55 = vadd.f32 %v3885_v27, %v2585_v22 }
 0x1f3   :  { %v2590_v57 = vpop.f32.mrf.mxu0 }
 0x1f4   :  { %v3897_v49 = vpop.f32.mrf.mxu1  ;;  %v3942_v16 = vld [vmem:[#allocation17_spill] sm:$0xff]  ;;  %v2591_v35 = vadd.f32 %v2590_v57, %v2538_v18  ;;  %v2642_v58 = vadd.f32 %v3890_v34, %v2589_v36 }
 0x1f5   :  { %v2592_v7 = vpop.f32.mrf.mxu0  ;;  %v2634_v32 = vadd.f32 %v3942_v16, %v2581_v56 }
 0x1f6   :  { %v2645_v17 = vpop.f32.mrf.mxu1  ;;  %v2593_v38 = vadd.f32 %v2592_v7, %v2540_v43  ;;  %v2644_v60 = vadd.f32 %v3897_v49, %v2591_v35 }
 0x1f7   :  { %v2594_v31 = vpop.f32.mrf.mxu0 }
 0x1f8   :  { %v2647_v2 = vpop.f32.mrf.mxu1  ;;  %v2595_v61 = vadd.f32 %v2594_v31, %v2542_v47  ;;  %v2646_v20 = vadd.f32 %v2645_v17, %v2593_v38 }
 0x1fa   :  { %v2648_v7 = vadd.f32 %v2647_v2, %v2595_v61 }
 0x229   :  { %v2684_v5 = vpop.f32.mrf.mxu0 }
 0x22a   :  { %v2737_v39 = vpop.f32.mrf.mxu1  ;;  %v2685_v6 = vadd.f32 %v2684_v5, %v2632_v33 }
 0x22b   :  { %v2686_v41 = vpop.f32.mrf.mxu0 }
 0x22c   :  { %v2739_v15 = vpop.f32.mrf.mxu1  ;;  %v2738_v8 = vadd.f32 %v2737_v39, %v2685_v6  ;;  %v2687_v42 = vadd.f32 %v2686_v41, %v2634_v32 }
 0x22d   :  { %v2688_v44 = vpop.f32.mrf.mxu0 }
 0x22e   :  { %v2741_v45 = vpop.f32.mrf.mxu1  ;;  %2756 = vst [vmem:[#allocation8] sm:$0xff] %v2738_v8  ;;  %v2740_v23 = vadd.f32 %v2739_v15, %v2687_v42  ;;  %v2689_v37 = vadd.f32 %v2688_v44, %v2636_v30 }
 0x22f   :  { %v2690_v24 = vpop.f32.mrf.mxu0 }
 0x230   :  { %v2743_v48 = vpop.f32.mrf.mxu1  ;;  %2757 = vst [vmem:[#allocation8 + $0x8] sm:$0xff] %v2740_v23  ;;  %v2742_v40 = vadd.f32 %v2741_v45, %v2689_v37  ;;  %v2691_v59 = vadd.f32 %v2690_v24, %v2638_v55 }
 0x231   :  { %v2694_v51 = vpop.f32.mrf.mxu0 }
 0x232   :  { %v2747_v50 = vpop.f32.mrf.mxu1  ;;  %2758 = vst [vmem:[#allocation8 + $0x10] sm:$0xff] %v2742_v40  ;;  %v2744_v27 = vadd.f32 %v2743_v48, %v2691_v59  ;;  %v2695_v57 = vadd.f32 %v2694_v51, %v2642_v58 }
 0x233   :  { %v2696_v52 = vpop.f32.mrf.mxu0 }
 0x234   :  { %v2749_v53 = vpop.f32.mrf.mxu1  ;;  %2759 = vst [vmem:[#allocation8 + $0x18] sm:$0xff] %v2744_v27  ;;  %v2748_v62 = vadd.f32 %v2747_v50, %v2695_v57  ;;  %v2697_v63 = vadd.f32 %v2696_v52, %v2644_v60 }
 0x235   :  { %v2698_v10 = vpop.f32.mrf.mxu0 }
 0x236   :  { %v2751_v34 = vpop.f32.mrf.mxu1  ;;  %2760 = vst [vmem:[#allocation8 + $0x20] sm:$0xff] %v2748_v62  ;;  %v2750_v54 = vadd.f32 %v2749_v53, %v2697_v63  ;;  %v2699_v1 = vadd.f32 %v2698_v10, %v2646_v20 }
 0x237   :  { %v2700_v0 = vpop.f32.mrf.mxu0 }
 0x238   :  { %2761 = vst [vmem:[#allocation8 + $0x28] sm:$0xff] %v2750_v54  ;;  %v2752_v49 = vadd.f32 %v2751_v34, %v2699_v1  ;;  %v2701_v9 = vadd.f32 %v2700_v0, %v2648_v7  ;;  %v2753_v56 = vpop.f32.mrf.mxu1 }
 0x23a   :  { %2762 = vst [vmem:[#allocation8 + $0x30] sm:$0xff] %v2752_v49  ;;  %v2754_v3 = vadd.f32 %v2753_v56, %v2701_v9 }
 0x23c   :  { %2763 = vst [vmem:[#allocation8 + $0x38] sm:$0xff] %v2754_v3 }
 0x23d   :  { %3763 = shalt.err (!%p3760_p5)
}
 0x23e   :  { %s3786_s4 = smov 256   ;;  %s3787_s5 = smov 16  }
 0x23f   :  { %2775 = dma.vmem_to_hbm [thread:$0]  %s2770_s2, 1024, %s3934_s3, [#allocation4], %s3786_s4, %s3786_s4, %s3787_s5  }
 0x240   :  { %3776 = dma.done.wait [#allocation4], 1024  }
 0x241   :  { %3777 = vsyncadd [#allocation4], 4294966272 }
 0x242   :  { %2779 = vsyncpa [#allocation3], 1 }
 0x243   :  { %2780 = vsyncpa [#allocation6], 1 }
 0x244   :  { %2781 = vsyncpa [#allocation4], 1 }

</bundles_post_ra>
